<compile_context>
chip_gen: v7x
topology: tpu7x:2x2x1
jax: 0.10.0
libtpu: 0.0.40
codegen_flags: <defaults>
</compile_context>

<pallas_src>
import jax
import jax.numpy as jnp
from jax.experimental import pallas as pl
from jax.experimental.pallas import tpu as pltpu

BN_EPS = 1e-5          # torch.nn.BatchNorm1d default
NORM_EPS = 1e-12       # F.normalize default


def _round_up(x, m):
    return (x + m - 1) // m * m


def _cdiv(a, b):
    return (a + b - 1) // b


# ----------------------------------------------------------------------------
# Kernel
# ----------------------------------------------------------------------------
def clip_classifier_kernel(
    x_ref,                 # (tm, tk)        bf16 image tile
    wenc_ref,              # (tk, D_pad)     bf16 encoder-weight tile
    w1_ref,                # (D_pad, 512)    bf16, BN1 folded in
    b1_ref,                # (1, 512)        f32, BN1 + encoder bias folded in
    w2_ref,                # (512, 256)      bf16, BN2 folded in
    b2_ref,                # (1, 256)        f32, BN2 folded in
    wfc_ref,               # (256, NC_pad)   bf16
    bfc_ref,               # (1, NC_pad)     f32
    out_ref,               # (tm, NC_pad)    f32
    acc_ref,               # (tm, D_pad)     f32 VMEM scratch accumulator
):
    k = pl.program_id(1)

    @pl.when(k == 0)
    def _():
        acc_ref[...] = jnp.zeros_like(acc_ref)

    # --- stand-in for clip.encode_image: streamed K-tiled GEMM on the MXU ---
    acc_ref[...] += jnp.dot(x_ref[...], wenc_ref[...],
                            preferred_element_type=jnp.float32)

    @pl.when(k == pl.num_programs(1) - 1)
    def _():
        feat = acc_ref[...]                                       # f32

        # projection[0..2]: Linear -> BatchNorm1d(eval, folded) -> ReLU
        # (encoder bias is folded into b1)
        h = jnp.dot(feat.astype(jnp.bfloat16), w1_ref[...],
                    preferred_element_type=jnp.float32) + b1_ref[...]
        h = jnp.maximum(h, 0.0)
        # projection[3]: Dropout(0.1) -> identity in eval mode

        # projection[4..5]: Linear -> BatchNorm1d(eval, folded)
        p = jnp.dot(h.astype(jnp.bfloat16), w2_ref[...],
                    preferred_element_type=jnp.float32) + b2_ref[...]

        # F.normalize(projected, dim=-1): single rsqrt (EUP), no divide
        sumsq = jnp.sum(p * p, axis=-1, keepdims=True)
        p = p * jax.lax.rsqrt(jnp.maximum(sumsq, NORM_EPS * NORM_EPS))

        # fc: Linear(256, num_classes) -> lane-padded output
        out_ref[...] = (
            jnp.dot(p.astype(jnp.bfloat16), wfc_ref[...],
                    preferred_element_type=jnp.float32) + bfc_ref[...])


# ----------------------------------------------------------------------------
# Parameters (PyTorch-style init, f32, unfolded) and kernel-ready prep
# ----------------------------------------------------------------------------
def init_params(key, in_features, output_dim, num_classes):
    """Deterministic PyTorch-style (uniform +-1/sqrt(fan_in)) parameter init."""
    def linear(k, fan_in, fan_out):
        kw, kb = jax.random.split(k)
        bound = 1.0 / jnp.sqrt(fan_in)
        w = jax.random.uniform(kw, (fan_in, fan_out), jnp.float32, -bound, bound)
        b = jax.random.uniform(kb, (1, fan_out), jnp.float32, -bound, bound)
        return w, b

    def batchnorm(dim):
        return (jnp.ones((1, dim), jnp.float32),    # gamma
                jnp.zeros((1, dim), jnp.float32),   # beta
                jnp.zeros((1, dim), jnp.float32),   # running_mean
                jnp.ones((1, dim), jnp.float32))    # running_var

    k_enc, k1, k2, k_fc = jax.random.split(key, 4)
    wenc, benc = linear(k_enc, in_features, output_dim)
    w1, b1 = linear(k1, output_dim, 512)
    g1, beta1, rm1, rv1 = batchnorm(512)
    w2, b2 = linear(k2, 512, 256)
    g2, beta2, rm2, rv2 = batchnorm(256)
    wfc, bfc = linear(k_fc, 256, num_classes)
    return (wenc, benc, w1, b1, g1, beta1, rm1, rv1,
            w2, b2, g2, beta2, rm2, rv2, wfc, bfc)


def prepare_params(params, CHW_pad, D_pad, NC_pad):
    """Fold eval-mode BN into the preceding Linear, fold the encoder bias into
    b1, zero-pad lane dims, cast matmul weights to bf16 (biases stay f32)."""
    (wenc, benc, w1, b1, g1, beta1, rm1, rv1,
     w2, b2, g2, beta2, rm2, rv2, wfc, bfc) = params

    def fold_bn(w, b, gamma, beta, rm, rv):
        scale = gamma * jax.lax.rsqrt(rv + BN_EPS)          # (1, out)
        return w * scale, (b - rm) * scale + beta

    def pad2(a, rows, cols):
        return jnp.pad(a, ((0, rows - a.shape[0]), (0, cols - a.shape[1])))

    w1f, b1f = fold_bn(w1, b1, g1, beta1, rm1, rv1)
    w2f, b2f = fold_bn(w2, b2, g2, beta2, rm2, rv2)

    # (x@wenc + benc)@w1f + b1f  ==  x@wenc@w1f + (benc@w1f + b1f)
    b1f = b1f + benc @ w1f                                   # f32 fold

    wenc_p = pad2(wenc, CHW_pad, D_pad).astype(jnp.bfloat16)
    w1_p = pad2(w1f, D_pad, w1f.shape[1]).astype(jnp.bfloat16)
    wfc_p = pad2(wfc, wfc.shape[0], NC_pad).astype(jnp.bfloat16)
    bfc_p = pad2(bfc, 1, NC_pad)                             # f32
    return (wenc_p, w1_p, b1f, w2f.astype(jnp.bfloat16), b2f, wfc_p, bfc_p)


# ----------------------------------------------------------------------------
# Wrapper
# ----------------------------------------------------------------------------
def clip_classifier_forward(x_nchw, params, num_classes, *,
                            tm_max=512, tk_max=4096):
    B = x_nchw.shape[0]
    x_flat = x_nchw.reshape(B, -1)              # NCHW -> (B, C*H*W), row-major
    CHW = x_flat.shape[1]
    D = params[0].shape[1]                      # clip visual output_dim

    D_pad = _round_up(D, 128)
    NC_pad = _round_up(num_classes, 128)

    # K tiling: minimal padding beyond the 128-lane requirement.
    CHW_128 = _round_up(CHW, 128)
    n_k = _cdiv(CHW_128, tk_max)
    tk = _round_up(_cdiv(CHW_128, n_k), 128)
    CHW_pad = tk * n_k

    # Batch tiling: bf16 x -> sublane multiple of 16; balanced tile, and >=2
    # batch steps when possible so both v7x TensorCores get work.
    B16 = _round_up(B, 16)
    n_b = max(_cdiv(B16, tm_max), 2 if B16 >= 32 else 1)
    tm = _round_up(_cdiv(B16, n_b), 16)
    B_pad = _round_up(B16, tm)

    # Stream x as bf16 (halves the dominant HBM stream); cast before padding so
    # the wrapper pad copy is also half-width.
    x_p = jnp.pad(x_flat.astype(jnp.bfloat16),
                  ((0, B_pad - B), (0, CHW_pad - CHW)))

    kparams = prepare_params(params, CHW_pad, D_pad, NC_pad)
    H1 = kparams[1].shape[1]                    # 512
    H2 = kparams[3].shape[1]                    # 256

    grid = (B_pad // tm, CHW_pad // tk)

    # VMEM limit: ~80% of this chip's physical capacity (never the whole
    # 64 MiB of a v7x TensorCore; exploits the 128 MiB of v5e/v6e).
    try:
        vmem_cap = int(pltpu.get_tpu_info().vmem_capacity_bytes)
    except Exception:
        vmem_cap = 64 * 1024 * 1024
    vmem_limit = int(vmem_cap * 0.8)

    flops = 2 * B_pad * (CHW_pad * D_pad + D_pad * H1 + H1 * H2 + H2 * NC_pad)
    bytes_accessed = int(
        int(x_p.size) * x_p.dtype.itemsize
        + (B_pad // tm) * int(kparams[0].size) * kparams[0].dtype.itemsize
        + sum(int(a.size) * a.dtype.itemsize for a in kparams[1:])
        + B_pad * NC_pad * 4)
    cost = pl.CostEstimate(flops=flops, transcendentals=B_pad,
                           bytes_accessed=bytes_accessed)

    def build_in_specs(single_buffer_params):
        def param_spec(shape):
            idx = lambda i, k: (0, 0)
            if single_buffer_params:
                try:
                    # Grid-invariant operand: single-buffer it to save VMEM and
                    # per-step DMA descriptor work.
                    return pl.BlockSpec(shape, idx, pipeline_mode=pl.Buffered(1))
                except TypeError:
                    pass
            return pl.BlockSpec(shape, idx)

        return [
            pl.BlockSpec((tm, tk), lambda i, k: (i, k)),       # x tile (bf16)
            pl.BlockSpec((tk, D_pad), lambda i, k: (k, 0)),    # wenc tile
            param_spec((D_pad, H1)),                           # w1 (BN folded)
            param_spec((1, H1)),                               # b1 (BN+benc folded)
            param_spec((H1, H2)),                              # w2 (BN folded)
            param_spec((1, H2)),                               # b2 (BN folded)
            param_spec((H2, NC_pad)),                          # wfc
            param_spec((1, NC_pad)),                           # bfc
        ]

    def run(single_buffer_params):
        return pl.pallas_call(
            clip_classifier_kernel,
            out_shape=jax.ShapeDtypeStruct((B_pad, NC_pad), jnp.float32),
            grid_spec=pltpu.PrefetchScalarGridSpec(
                num_scalar_prefetch=0,
                grid=grid,
                in_specs=build_in_specs(single_buffer_params),
                out_specs=pl.BlockSpec((tm, NC_pad), lambda i, k: (i, 0)),
                scratch_shapes=[pltpu.VMEM((tm, D_pad), jnp.float32)],
            ),
            compiler_params=pltpu.CompilerParams(
                dimension_semantics=("parallel", "arbitrary"),
                vmem_limit_bytes=vmem_limit,
            ),
            cost_estimate=cost,
        )(x_p, *kparams)

    try:
        out_pad = run(True)
    except Exception:
        # Fallback if this JAX version rejects Buffered(1): plain
        # double-buffered constant specs are functionally identical.
        out_pad = run(False)

    return out_pad[:B, :num_classes]


# ----------------------------------------------------------------------------
# Pure-JAX f32 reference (unfolded BN, matches PyTorch eval-mode semantics)
# ----------------------------------------------------------------------------
def reference_forward(x_nchw, params):
    (wenc, benc, w1, b1, g1, beta1, rm1, rv1,
     w2, b2, g2, beta2, rm2, rv2, wfc, bfc) = params
    x = x_nchw.astype(jnp.float32).reshape(x_nchw.shape[0], -1)
    feat = x @ wenc + benc
    h = feat @ w1 + b1
    h = (h - rm1) * jax.lax.rsqrt(rv1 + BN_EPS) * g1 + beta1
    h = jnp.maximum(h, 0.0)
    p = h @ w2 + b2
    p = (p - rm2) * jax.lax.rsqrt(rv2 + BN_EPS) * g2 + beta2
    n = jnp.sqrt(jnp.sum(p * p, axis=-1, keepdims=True))
    p = p / jnp.maximum(n, NORM_EPS)
    return p @ wfc + bfc


if __name__ == "__main__":
    # Small shapes consistent with the module's forward.
    B, C, H, W = 2, 4, 16, 16
    OUTPUT_DIM = 32        # clip_model.visual.output_dim (stand-in)
    NUM_CLASSES = 10

    key = jax.random.PRNGKey(0)
    k_x, k_p = jax.random.split(key)

    x = jax.random.normal(k_x, (B, C, H, W), jnp.float32)   # NCHW like PyTorch
    params = init_params(k_p, C * H * W, OUTPUT_DIM, NUM_CLASSES)

    # tk_max=512 -> 2 K-steps over CHW=1024, exercising the accumulator path.
    logits = clip_classifier_forward(x, params, NUM_CLASSES, tk_max=512)
    jax.block_until_ready(logits)

    ref = reference_forward(x, params)

    assert logits.shape == (B, NUM_CLASSES)
    assert logits.dtype == jnp.float32
    max_err = float(jnp.max(jnp.abs(logits - ref)))
    assert max_err < 3e-2, f"max abs error vs f32 reference: {max_err}"
    print("KERNEL_OK")
</pallas_src>

<mosaic_0001>
module attributes {stable_mosaic.version = 11 : i64} {
  func.func @clip_classifier_kernel(%arg0: i32, %arg1: i32, %arg2: memref<16x512xbf16, #tpu.memory_space<vmem>>, %arg3: memref<512x128xbf16, #tpu.memory_space<vmem>>, %arg4: memref<128x512xbf16, #tpu.memory_space<vmem>>, %arg5: memref<1x512xf32, #tpu.memory_space<vmem>>, %arg6: memref<512x256xbf16, #tpu.memory_space<vmem>>, %arg7: memref<1x256xf32, #tpu.memory_space<vmem>>, %arg8: memref<256x128xbf16, #tpu.memory_space<vmem>>, %arg9: memref<1x128xf32, #tpu.memory_space<vmem>>, %arg10: memref<16x128xf32, #tpu.memory_space<vmem>>, %arg11: memref<16x128xf32, #tpu.memory_space<vmem>>) attributes {dimension_semantics = [#tpu.dimension_semantics<parallel>, #tpu.dimension_semantics<arbitrary>], iteration_bounds = array<i64: 1, 2>, scalar_prefetch = 0 : i64, scratch_operands = 1 : i64, tpu.core_type = #tpu.core_type<tc>, window_params = [{transform_indices = @transform_0, window_bounds = array<i64: 16, 512>}, {transform_indices = @transform_1, window_bounds = array<i64: 512, 128>}, {pipeline_mode = #tpu.pipeline_mode<synchronous>, transform_indices = @transform_2, window_bounds = array<i64: 128, 512>}, {pipeline_mode = #tpu.pipeline_mode<synchronous>, transform_indices = @transform_3, window_bounds = array<i64: 1, 512>}, {pipeline_mode = #tpu.pipeline_mode<synchronous>, transform_indices = @transform_4, window_bounds = array<i64: 512, 256>}, {pipeline_mode = #tpu.pipeline_mode<synchronous>, transform_indices = @transform_5, window_bounds = array<i64: 1, 256>}, {pipeline_mode = #tpu.pipeline_mode<synchronous>, transform_indices = @transform_6, window_bounds = array<i64: 256, 128>}, {pipeline_mode = #tpu.pipeline_mode<synchronous>, transform_indices = @transform_7, window_bounds = array<i64: 1, 128>}, {transform_indices = @transform_8, window_bounds = array<i64: 16, 128>}]} {
    %c0_i32 = arith.constant 0 : i32
    %0 = arith.cmpi eq, %arg1, %c0_i32 : i32
    %1 = arith.extui %0 : i1 to i32
    %c0_i32_0 = arith.constant 0 : i32
    %2 = arith.cmpi ne, %1, %c0_i32_0 : i32
    scf.if %2 {
      %cst_9 = arith.constant 0.000000e+00 : f32
      %12 = vector.broadcast %cst_9 : f32 to vector<16x128xf32>
      %c0_10 = arith.constant 0 : index
      %c0_11 = arith.constant 0 : index
      %13 = vector.load %arg11[%c0_10, %c0_11] : memref<16x128xf32, #tpu.memory_space<vmem>>, vector<16x128xf32>
      tpu.vector_store %arg11[%c0_10, %c0_11], %12 {strides = array<i32>} : memref<16x128xf32, #tpu.memory_space<vmem>>, vector<16x128xf32>,
    } else {
    }
    %c0 = arith.constant 0 : index
    %c0_1 = arith.constant 0 : index
    %3 = vector.load %arg11[%c0, %c0_1] : memref<16x128xf32, #tpu.memory_space<vmem>>, vector<16x128xf32>
    %c0_2 = arith.constant 0 : index
    %c0_3 = arith.constant 0 : index
    %4 = vector.load %arg2[%c0_2, %c0_3] : memref<16x512xbf16, #tpu.memory_space<vmem>>, vector<16x512xbf16>
    %c0_4 = arith.constant 0 : index
    %c0_5 = arith.constant 0 : index
    %5 = vector.load %arg3[%c0_4, %c0_5] : memref<512x128xbf16, #tpu.memory_space<vmem>>, vector<512x128xbf16>
    %cst = arith.constant dense<0.000000e+00> : vector<16x128xf32>
    %6 = tpu.matmul %4, %5, %cst {dimension_numbers = #tpu.dot_dimension_numbers<[1], [0], [0], [1], [0, 0, 1, 1], [], []>} : vector<16x512xbf16>, vector<512x128xbf16>, vector<16x128xf32> -> vector<16x128xf32>
    %7 = arith.addf %3, %6 : vector<16x128xf32>
    %c0_6 = arith.constant 0 : index
    %c0_7 = arith.constant 0 : index
    %8 = vector.load %arg11[%c0_6, %c0_7] : memref<16x128xf32, #tpu.memory_space<vmem>>, vector<16x128xf32>
    tpu.vector_store %arg11[%c0_6, %c0_7], %7 {strides = array<i32>} : memref<16x128xf32, #tpu.memory_space<vmem>>, vector<16x128xf32>,
    %c1_i32 = arith.constant 1 : i32
    %9 = arith.cmpi eq, %arg1, %c1_i32 : i32
    %10 = arith.extui %9 : i1 to i32
    %c0_i32_8 = arith.constant 0 : i32
    %11 = arith.cmpi ne, %10, %c0_i32_8 : i32
    scf.if %11 {
      %c0_9 = arith.constant 0 : index
      %c0_10 = arith.constant 0 : index
      %12 = vector.load %arg11[%c0_9, %c0_10] : memref<16x128xf32, #tpu.memory_space<vmem>>, vector<16x128xf32>
      %13 = arith.truncf %12 : vector<16x128xf32> to vector<16x128xbf16>
      %c0_11 = arith.constant 0 : index
      %c0_12 = arith.constant 0 : index
      %14 = vector.load %arg4[%c0_11, %c0_12] : memref<128x512xbf16, #tpu.memory_space<vmem>>, vector<128x512xbf16>
      %cst_13 = arith.constant dense<0.000000e+00> : vector<16x512xf32>
      %15 = tpu.matmul %13, %14, %cst_13 {dimension_numbers = #tpu.dot_dimension_numbers<[1], [0], [0], [1], [0, 0, 1, 1], [], []>} : vector<16x128xbf16>, vector<128x512xbf16>, vector<16x512xf32> -> vector<16x512xf32>
      %c0_14 = arith.constant 0 : index
      %c0_15 = arith.constant 0 : index
      %16 = vector.load %arg5[%c0_14, %c0_15] : memref<1x512xf32, #tpu.memory_space<vmem>>, vector<1x512xf32>
      %17 = vector.broadcast %16 : vector<1x512xf32> to vector<16x512xf32>
      %18 = arith.addf %15, %17 : vector<16x512xf32>
      %cst_16 = arith.constant 0.000000e+00 : f32
      %19 = vector.broadcast %cst_16 : f32 to vector<16x512xf32>
      %20 = arith.maximumf %18, %19 : vector<16x512xf32>
      %21 = arith.truncf %20 : vector<16x512xf32> to vector<16x512xbf16>
      %c0_17 = arith.constant 0 : index
      %c0_18 = arith.constant 0 : index
      %22 = vector.load %arg6[%c0_17, %c0_18] : memref<512x256xbf16, #tpu.memory_space<vmem>>, vector<512x256xbf16>
      %cst_19 = arith.constant dense<0.000000e+00> : vector<16x256xf32>
      %23 = tpu.matmul %21, %22, %cst_19 {dimension_numbers = #tpu.dot_dimension_numbers<[1], [0], [0], [1], [0, 0, 1, 1], [], []>} : vector<16x512xbf16>, vector<512x256xbf16>, vector<16x256xf32> -> vector<16x256xf32>
      %c0_20 = arith.constant 0 : index
      %c0_21 = arith.constant 0 : index
      %24 = vector.load %arg7[%c0_20, %c0_21] : memref<1x256xf32, #tpu.memory_space<vmem>>, vector<1x256xf32>
      %25 = vector.broadcast %24 : vector<1x256xf32> to vector<16x256xf32>
      %26 = arith.addf %23, %25 : vector<16x256xf32>
      %27 = arith.mulf %26, %26 : vector<16x256xf32>
      %cst_22 = arith.constant dense<0.000000e+00> : vector<16xf32>
      %28 = vector.multi_reduction <add>, %27, %cst_22 [1] : vector<16x256xf32> to vector<16xf32>
      %29 = vector.shape_cast %28 : vector<16xf32> to vector<16x1xf32>
      %cst_23 = arith.constant 1.000000e-24 : f32
      %30 = vector.broadcast %cst_23 : f32 to vector<16x1xf32>
      %31 = arith.maximumf %29, %30 : vector<16x1xf32>
      %32 = math.rsqrt %31 : vector<16x1xf32>
      %33 = vector.broadcast %32 : vector<16x1xf32> to vector<16x256xf32>
      %34 = arith.mulf %26, %33 : vector<16x256xf32>
      %35 = arith.truncf %34 : vector<16x256xf32> to vector<16x256xbf16>
      %c0_24 = arith.constant 0 : index
      %c0_25 = arith.constant 0 : index
      %36 = vector.load %arg8[%c0_24, %c0_25] : memref<256x128xbf16, #tpu.memory_space<vmem>>, vector<256x128xbf16>
      %cst_26 = arith.constant dense<0.000000e+00> : vector<16x128xf32>
      %37 = tpu.matmul %35, %36, %cst_26 {dimension_numbers = #tpu.dot_dimension_numbers<[1], [0], [0], [1], [0, 0, 1, 1], [], []>} : vector<16x256xbf16>, vector<256x128xbf16>, vector<16x128xf32> -> vector<16x128xf32>
      %c0_27 = arith.constant 0 : index
      %c0_28 = arith.constant 0 : index
      %38 = vector.load %arg9[%c0_27, %c0_28] : memref<1x128xf32, #tpu.memory_space<vmem>>, vector<1x128xf32>
      %39 = vector.broadcast %38 : vector<1x128xf32> to vector<16x128xf32>
      %40 = arith.addf %37, %39 : vector<16x128xf32>
      %c0_29 = arith.constant 0 : index
      %c0_30 = arith.constant 0 : index
      %41 = vector.load %arg10[%c0_29, %c0_30] : memref<16x128xf32, #tpu.memory_space<vmem>>, vector<16x128xf32>
      tpu.vector_store %arg10[%c0_29, %c0_30], %40 {strides = array<i32>} : memref<16x128xf32, #tpu.memory_space<vmem>>, vector<16x128xf32>,
    } else {
    }
    return
  }
  func.func @transform_0(%arg0: i32, %arg1: i32) -> (i32, i32) {
    %c0_i32 = arith.constant 0 : i32
    return %arg0, %arg1 : i32, i32
  }
  func.func @transform_1(%arg0: i32, %arg1: i32) -> (i32, i32) {
    %c0_i32 = arith.constant 0 : i32
    %c0_i32_0 = arith.constant 0 : i32
    return %arg1, %c0_i32 : i32, i32
  }
  func.func @transform_2(%arg0: i32, %arg1: i32) -> (i32, i32) {
    %c0_i32 = arith.constant 0 : i32
    %c0_i32_0 = arith.constant 0 : i32
    %c0_i32_1 = arith.constant 0 : i32
    return %c0_i32, %c0_i32_0 : i32, i32
  }
  func.func @transform_3(%arg0: i32, %arg1: i32) -> (i32, i32) {
    %c0_i32 = arith.constant 0 : i32
    %c0_i32_0 = arith.constant 0 : i32
    %c0_i32_1 = arith.constant 0 : i32
    return %c0_i32, %c0_i32_0 : i32, i32
  }
  func.func @transform_4(%arg0: i32, %arg1: i32) -> (i32, i32) {
    %c0_i32 = arith.constant 0 : i32
    %c0_i32_0 = arith.constant 0 : i32
    %c0_i32_1 = arith.constant 0 : i32
    return %c0_i32, %c0_i32_0 : i32, i32
  }
  func.func @transform_5(%arg0: i32, %arg1: i32) -> (i32, i32) {
    %c0_i32 = arith.constant 0 : i32
    %c0_i32_0 = arith.constant 0 : i32
    %c0_i32_1 = arith.constant 0 : i32
    return %c0_i32, %c0_i32_0 : i32, i32
  }
  func.func @transform_6(%arg0: i32, %arg1: i32) -> (i32, i32) {
    %c0_i32 = arith.constant 0 : i32
    %c0_i32_0 = arith.constant 0 : i32
    %c0_i32_1 = arith.constant 0 : i32
    return %c0_i32, %c0_i32_0 : i32, i32
  }
  func.func @transform_7(%arg0: i32, %arg1: i32) -> (i32, i32) {
    %c0_i32 = arith.constant 0 : i32
    %c0_i32_0 = arith.constant 0 : i32
    %c0_i32_1 = arith.constant 0 : i32
    return %c0_i32, %c0_i32_0 : i32, i32
  }
  func.func @transform_8(%arg0: i32, %arg1: i32) -> (i32, i32) {
    %c0_i32 = arith.constant 0 : i32
    %c0_i32_0 = arith.constant 0 : i32
    return %arg0, %c0_i32 : i32, i32
  }
}

module attributes {stable_mosaic.version = 11 : i64} {
  func.func @clip_classifier_kernel(%arg0: i32, %arg1: i32, %arg2: memref<16x512xbf16, #tpu.memory_space<vmem>>, %arg3: memref<512x128xbf16, #tpu.memory_space<vmem>>, %arg4: memref<128x512xbf16, #tpu.memory_space<vmem>>, %arg5: memref<1x512xf32, #tpu.memory_space<vmem>>, %arg6: memref<512x256xbf16, #tpu.memory_space<vmem>>, %arg7: memref<1x256xf32, #tpu.memory_space<vmem>>, %arg8: memref<256x128xbf16, #tpu.memory_space<vmem>>, %arg9: memref<1x128xf32, #tpu.memory_space<vmem>>, %arg10: memref<16x128xf32, #tpu.memory_space<vmem>>, %arg11: memref<16x128xf32, #tpu.memory_space<vmem>>) attributes {dimension_semantics = [#tpu.dimension_semantics<parallel>, #tpu.dimension_semantics<arbitrary>], iteration_bounds = array<i64: 1, 2>, scalar_prefetch = 0 : i64, scratch_operands = 1 : i64, tpu.core_type = #tpu.core_type<tc>, window_params = [{transform_indices = @transform_0, window_bounds = array<i64: 16, 512>}, {transform_indices = @transform_1, window_bounds = array<i64: 512, 128>}, {pipeline_mode = #tpu.pipeline_mode<synchronous>, transform_indices = @transform_2, window_bounds = array<i64: 128, 512>}, {pipeline_mode = #tpu.pipeline_mode<synchronous>, transform_indices = @transform_3, window_bounds = array<i64: 1, 512>}, {pipeline_mode = #tpu.pipeline_mode<synchronous>, transform_indices = @transform_4, window_bounds = array<i64: 512, 256>}, {pipeline_mode = #tpu.pipeline_mode<synchronous>, transform_indices = @transform_5, window_bounds = array<i64: 1, 256>}, {pipeline_mode = #tpu.pipeline_mode<synchronous>, transform_indices = @transform_6, window_bounds = array<i64: 256, 128>}, {pipeline_mode = #tpu.pipeline_mode<synchronous>, transform_indices = @transform_7, window_bounds = array<i64: 1, 128>}, {transform_indices = @transform_8, window_bounds = array<i64: 16, 128>}]} {
    %c0_i32 = arith.constant 0 : i32
    %0 = arith.cmpi eq, %arg1, %c0_i32 : i32
    %1 = arith.extui %0 : i1 to i32
    %c0_i32_0 = arith.constant 0 : i32
    %2 = arith.cmpi ne, %1, %c0_i32_0 : i32
    scf.if %2 {
      %cst_9 = arith.constant 0.000000e+00 : f32
      %12 = vector.broadcast %cst_9 : f32 to vector<16x128xf32>
      %c0_10 = arith.constant 0 : index
      %c0_11 = arith.constant 0 : index
      %13 = vector.load %arg11[%c0_10, %c0_11] : memref<16x128xf32, #tpu.memory_space<vmem>>, vector<16x128xf32>
      tpu.vector_store %arg11[%c0_10, %c0_11], %12 {strides = array<i32>} : memref<16x128xf32, #tpu.memory_space<vmem>>, vector<16x128xf32>,
    } else {
    }
    %c0 = arith.constant 0 : index
    %c0_1 = arith.constant 0 : index
    %3 = vector.load %arg11[%c0, %c0_1] : memref<16x128xf32, #tpu.memory_space<vmem>>, vector<16x128xf32>
    %c0_2 = arith.constant 0 : index
    %c0_3 = arith.constant 0 : index
    %4 = vector.load %arg2[%c0_2, %c0_3] : memref<16x512xbf16, #tpu.memory_space<vmem>>, vector<16x512xbf16>
    %c0_4 = arith.constant 0 : index
    %c0_5 = arith.constant 0 : index
    %5 = vector.load %arg3[%c0_4, %c0_5] : memref<512x128xbf16, #tpu.memory_space<vmem>>, vector<512x128xbf16>
    %cst = arith.constant dense<0.000000e+00> : vector<16x128xf32>
    %6 = tpu.matmul %4, %5, %cst {dimension_numbers = #tpu.dot_dimension_numbers<[1], [0], [0], [1], [0, 0, 1, 1], [], []>} : vector<16x512xbf16>, vector<512x128xbf16>, vector<16x128xf32> -> vector<16x128xf32>
    %7 = arith.addf %3, %6 : vector<16x128xf32>
    %c0_6 = arith.constant 0 : index
    %c0_7 = arith.constant 0 : index
    %8 = vector.load %arg11[%c0_6, %c0_7] : memref<16x128xf32, #tpu.memory_space<vmem>>, vector<16x128xf32>
    tpu.vector_store %arg11[%c0_6, %c0_7], %7 {strides = array<i32>} : memref<16x128xf32, #tpu.memory_space<vmem>>, vector<16x128xf32>,
    %c1_i32 = arith.constant 1 : i32
    %9 = arith.cmpi eq, %arg1, %c1_i32 : i32
    %10 = arith.extui %9 : i1 to i32
    %c0_i32_8 = arith.constant 0 : i32
    %11 = arith.cmpi ne, %10, %c0_i32_8 : i32
    scf.if %11 {
      %c0_9 = arith.constant 0 : index
      %c0_10 = arith.constant 0 : index
      %12 = vector.load %arg11[%c0_9, %c0_10] : memref<16x128xf32, #tpu.memory_space<vmem>>, vector<16x128xf32>
      %13 = arith.truncf %12 : vector<16x128xf32> to vector<16x128xbf16>
      %c0_11 = arith.constant 0 : index
      %c0_12 = arith.constant 0 : index
      %14 = vector.load %arg4[%c0_11, %c0_12] : memref<128x512xbf16, #tpu.memory_space<vmem>>, vector<128x512xbf16>
      %cst_13 = arith.constant dense<0.000000e+00> : vector<16x512xf32>
      %15 = tpu.matmul %13, %14, %cst_13 {dimension_numbers = #tpu.dot_dimension_numbers<[1], [0], [0], [1], [0, 0, 1, 1], [], []>} : vector<16x128xbf16>, vector<128x512xbf16>, vector<16x512xf32> -> vector<16x512xf32>
      %c0_14 = arith.constant 0 : index
      %c0_15 = arith.constant 0 : index
      %16 = vector.load %arg5[%c0_14, %c0_15] : memref<1x512xf32, #tpu.memory_space<vmem>>, vector<1x512xf32>
      %17 = vector.broadcast %16 : vector<1x512xf32> to vector<16x512xf32>
      %18 = arith.addf %15, %17 : vector<16x512xf32>
      %cst_16 = arith.constant 0.000000e+00 : f32
      %19 = vector.broadcast %cst_16 : f32 to vector<16x512xf32>
      %20 = arith.maximumf %18, %19 : vector<16x512xf32>
      %21 = arith.truncf %20 : vector<16x512xf32> to vector<16x512xbf16>
      %c0_17 = arith.constant 0 : index
      %c0_18 = arith.constant 0 : index
      %22 = vector.load %arg6[%c0_17, %c0_18] : memref<512x256xbf16, #tpu.memory_space<vmem>>, vector<512x256xbf16>
      %cst_19 = arith.constant dense<0.000000e+00> : vector<16x256xf32>
      %23 = tpu.matmul %21, %22, %cst_19 {dimension_numbers = #tpu.dot_dimension_numbers<[1], [0], [0], [1], [0, 0, 1, 1], [], []>} : vector<16x512xbf16>, vector<512x256xbf16>, vector<16x256xf32> -> vector<16x256xf32>
      %c0_20 = arith.constant 0 : index
      %c0_21 = arith.constant 0 : index
      %24 = vector.load %arg7[%c0_20, %c0_21] : memref<1x256xf32, #tpu.memory_space<vmem>>, vector<1x256xf32>
      %25 = vector.broadcast %24 : vector<1x256xf32> to vector<16x256xf32>
      %26 = arith.addf %23, %25 : vector<16x256xf32>
      %27 = arith.mulf %26, %26 : vector<16x256xf32>
      %cst_22 = arith.constant dense<0.000000e+00> : vector<16xf32>
      %28 = vector.multi_reduction <add>, %27, %cst_22 [1] : vector<16x256xf32> to vector<16xf32>
      %29 = vector.shape_cast %28 : vector<16xf32> to vector<16x1xf32>
      %cst_23 = arith.constant 1.000000e-24 : f32
      %30 = vector.broadcast %cst_23 : f32 to vector<16x1xf32>
      %31 = arith.maximumf %29, %30 : vector<16x1xf32>
      %32 = math.rsqrt %31 : vector<16x1xf32>
      %33 = vector.broadcast %32 : vector<16x1xf32> to vector<16x256xf32>
      %34 = arith.mulf %26, %33 : vector<16x256xf32>
      %35 = arith.truncf %34 : vector<16x256xf32> to vector<16x256xbf16>
      %c0_24 = arith.constant 0 : index
      %c0_25 = arith.constant 0 : index
      %36 = vector.load %arg8[%c0_24, %c0_25] : memref<256x128xbf16, #tpu.memory_space<vmem>>, vector<256x128xbf16>
      %cst_26 = arith.constant dense<0.000000e+00> : vector<16x128xf32>
      %37 = tpu.matmul %35, %36, %cst_26 {dimension_numbers = #tpu.dot_dimension_numbers<[1], [0], [0], [1], [0, 0, 1, 1], [], []>} : vector<16x256xbf16>, vector<256x128xbf16>, vector<16x128xf32> -> vector<16x128xf32>
      %c0_27 = arith.constant 0 : index
      %c0_28 = arith.constant 0 : index
      %38 = vector.load %arg9[%c0_27, %c0_28] : memref<1x128xf32, #tpu.memory_space<vmem>>, vector<1x128xf32>
      %39 = vector.broadcast %38 : vector<1x128xf32> to vector<16x128xf32>
      %40 = arith.addf %37, %39 : vector<16x128xf32>
      %c0_29 = arith.constant 0 : index
      %c0_30 = arith.constant 0 : index
      %41 = vector.load %arg10[%c0_29, %c0_30] : memref<16x128xf32, #tpu.memory_space<vmem>>, vector<16x128xf32>
      tpu.vector_store %arg10[%c0_29, %c0_30], %40 {strides = array<i32>} : memref<16x128xf32, #tpu.memory_space<vmem>>, vector<16x128xf32>,
    } else {
    }
    return
  }
  func.func @transform_0(%arg0: i32, %arg1: i32) -> (i32, i32) {
    %c0_i32 = arith.constant 0 : i32
    return %arg0, %arg1 : i32, i32
  }
  func.func @transform_1(%arg0: i32, %arg1: i32) -> (i32, i32) {
    %c0_i32 = arith.constant 0 : i32
    %c0_i32_0 = arith.constant 0 : i32
    return %arg1, %c0_i32 : i32, i32
  }
  func.func @transform_2(%arg0: i32, %arg1: i32) -> (i32, i32) {
    %c0_i32 = arith.constant 0 : i32
    %c0_i32_0 = arith.constant 0 : i32
    %c0_i32_1 = arith.constant 0 : i32
    return %c0_i32, %c0_i32_0 : i32, i32
  }
  func.func @transform_3(%arg0: i32, %arg1: i32) -> (i32, i32) {
    %c0_i32 = arith.constant 0 : i32
    %c0_i32_0 = arith.constant 0 : i32
    %c0_i32_1 = arith.constant 0 : i32
    return %c0_i32, %c0_i32_0 : i32, i32
  }
  func.func @transform_4(%arg0: i32, %arg1: i32) -> (i32, i32) {
    %c0_i32 = arith.constant 0 : i32
    %c0_i32_0 = arith.constant 0 : i32
    %c0_i32_1 = arith.constant 0 : i32
    return %c0_i32, %c0_i32_0 : i32, i32
  }
  func.func @transform_5(%arg0: i32, %arg1: i32) -> (i32, i32) {
    %c0_i32 = arith.constant 0 : i32
    %c0_i32_0 = arith.constant 0 : i32
    %c0_i32_1 = arith.constant 0 : i32
    return %c0_i32, %c0_i32_0 : i32, i32
  }
  func.func @transform_6(%arg0: i32, %arg1: i32) -> (i32, i32) {
    %c0_i32 = arith.constant 0 : i32
    %c0_i32_0 = arith.constant 0 : i32
    %c0_i32_1 = arith.constant 0 : i32
    return %c0_i32, %c0_i32_0 : i32, i32
  }
  func.func @transform_7(%arg0: i32, %arg1: i32) -> (i32, i32) {
    %c0_i32 = arith.constant 0 : i32
    %c0_i32_0 = arith.constant 0 : i32
    %c0_i32_1 = arith.constant 0 : i32
    return %c0_i32, %c0_i32_0 : i32, i32
  }
  func.func @transform_8(%arg0: i32, %arg1: i32) -> (i32, i32) {
    %c0_i32 = arith.constant 0 : i32
    %c0_i32_0 = arith.constant 0 : i32
    return %arg0, %c0_i32 : i32, i32
  }
}

</mosaic_0001>

<bundles_post_ra>
// kernel: tpu_custom_call.1
= control target key start
LH: loop header
LB: loop body
LE: loop exit
PB: predicated region body
PF: predicated region fallthrough
CT: control target
= control target key end

     0   :  { %s3153_s0 = inlined_call_operand.hbm [shape: bf16[16,1024], index: 0, kind: input, shape index: {}]   ;;  %s3154_s1 = inlined_call_operand.hbm [shape: bf16[1024,128], index: 1, kind: input, shape index: {}]   ;;  %s3155_s2 = inlined_call_operand.hbm [shape: bf16[128,512], index: 2, kind: input, shape index: {}]   ;;  %s3156_s3 = inlined_call_operand.vmem [shape: f32[1,512], index: 3, kind: input, shape index: {}]   ;;  %s3157_s4 = inlined_call_operand.hbm [shape: bf16[512,256], index: 4, kind: input, shape index: {}]   ;;  %s3158_s5 = inlined_call_operand.vmem [shape: f32[1,256], index: 5, kind: input, shape index: {}]   ;;  %s3159_s6 = inlined_call_operand.hbm [shape: bf16[256,128], index: 6, kind: input, shape index: {}]   ;;  %s3160_s7 = inlined_call_operand.vmem [shape: f32[1,128], index: 7, kind: input, shape index: {}]   ;;  %s3161_s8 = inlined_call_operand.hbm [shape: f32[16,128], index: 8, kind: output, shape index: {}]  }
   0x1   :  { %3171 = sst [smem:[#allocation18_spill]] %s3153_s0 }
   0x2   :  { %3172 = sst [smem:[#allocation19_spill]] %s3155_s2 }
   0x3   :  { %3173 = sst [smem:[#allocation20_spill]] %s3157_s4 }
   0x4   :  { %3174 = sst [smem:[#allocation21_spill]] %s3160_s7 }
   0x5   :  { %3175 = sst [smem:[#allocation22_spill]] %s3161_s8 }
   0x6   :  { %13 = vsyncpa [#allocation4], 0 }
   0x7   :  { %15 = vsyncpa [#allocation4 + $0x1], 0 }
   0x8   :  { %16 = vsyncpa [#allocation7], 0 }
   0x9   :  { %18 = vsyncpa [#allocation7 + $0x1], 0 }
   0xa   :  { %19 = vsyncpa [#allocation10], 0 }
   0xb   :  { %20 = vsyncpa [#allocation5], 0  ;;  %s2782_s27 = smov 0   ;;  %s2784_s28 = smov 0  }
   0xc   :  { %s2786_s29 = smov 0   ;;  %s2788_s30 = smov 0  }
   0xd   :  { %s2790_s9 = smov 0   ;;  %s2792_s10 = smov 0  }
   0xe LB: > { %s2811_s11 = sadd.s32 4294967295, %s2718_s10   ;;  %p54_p0 = scmp.ne.s32.totalorder %s2706_s29, %s2702_s28  ;;  %s2718_s10 = sphi %s2792_s10, %s26_s10   ;;  %s2714_s9 = sphi %s2790_s9, %s3205_s9   ;;  %s2710_s30 = sphi %s2788_s30, %s3204_s30   ;;  %s2706_s29 = sphi %s2786_s29, %s3203_s29   ;;  %s2702_s28 = sphi %s2784_s28, %s3202_s28   ;;  %s2698_s27 = sphi %s2782_s27, %s3201_s27  }
   0xf   : > { %p55_p1 = scmp.eq.s32.totalorder %s2718_s10, 0  ;;  %p60_p2 = scmp.ne.s32.totalorder %s2702_s28, %s2698_s27 }
  0x10   : > { %p3162_p3 = scmp.eq.s32.totalorder %s2811_s11, 0  ;;  %p1923_p5 = scmp.ge.s32.totalorder %s2718_s10, 1 }
  0x11   : > { %p56_p4 = por %p55_p1, %p54_p0  ;;  %p249_p7 = scmp.lt.s32.totalorder %s2718_s10, 3 }
  0x12   : > { %p2822_p6 = por %p3162_p3, %p60_p2  ;;  %s2720_s15 = smov [#allocation8]  }
  0x13   : > { %p2827_p8 = pnand %p1923_p5, %p249_p7  ;;  %s261_s16 = sshll.u32 %s2720_s15, 4  ;;  %s2831_s16 = int_to_ptr.vmem [resolvable:$true] %s261_s16 }
  0x14   : > { %s3176_s13 = scalar_select %p2822_p6, 1, 0 }
  0x15   : > { %s3177_s14 = scalar_select %p2827_p8, 1, 0 }
  0x16   : > { %p2191_p9 = pneg %p2827_p8  ;;  %p2211_p10 = scmp.lt.s32.totalorder %s2718_s10, 2 }
  0x17   : > { %s2721_s19 = smov [#allocation9]   ;;  %s3180_s2 = sld [smem:[#allocation19_spill]] }
  0x18   : > { %p2838_p11 = pnand %p2191_p9, %p3162_p3  ;;  %p2842_p12 = pnand %p2211_p10, %p56_p4 }
  0x19   : > { %s277_s20 = sshll.u32 %s2721_s19, 4  ;;  %s2846_s20 = int_to_ptr.vmem [resolvable:$true] %s277_s20 }
  0x1a   : > { %s3179_s18 = scalar_select %p2842_p12, 1, 0 }
  0x1b   : > { %p2856_p0 = pneg %p2838_p11 }
  0x1d   : > { %s2482_s23 = scalar_lea.hbm %s3180_s2, 4096 }
  0x1e   : > { %p2483_p13 = scmp.ne.s32.totalorder %s3180_s2, %s2482_s23  ;;  %p2489_p4 = scmp.lt.u32.totalorder %s2482_s23, %s3180_s2 }
  0x20   : > { %p2485_p1 = pnand %p2856_p0, %p2483_p13 }
  0x22   : > { %p2486_p2 = pneg %p2485_p1 }
  0x24   : > { %p2491_p5 = pnand %p2489_p4, %p2486_p2 }
  0x26   : > { %2494 = shalt.err (!%p2491_p5)
}
  0x27   : > { %s2495_s19 = scalar_lea.vmem %s2831_s16, 4096  ;;  %p2503_p3 = scmp.lt.s32.totalorder %s2831_s16, %s2831_s16 }
  0x28   : > { %p2496_p7 = scmp.ne.s32.totalorder %s2831_s16, %s2495_s19  ;;  %p2504_p6 = scmp.lt.s32.totalorder %s2495_s19, %s2495_s19 }
  0x2a   : > { %p2498_p9 = pnand %p2496_p7, %p2856_p0  ;;  %p2505_p13 = por %p2504_p6, %p2503_p3 }
  0x2c   : > { %p2499_p10 = pneg %p2498_p9 }
  0x2e   : > { %p2506_p1 = pnand %p2505_p13, %p2499_p10 }
  0x30   : > { %2509 = shalt.err (!%p2506_p1)
}
  0x31   : > { %s3165_s21 = smov 256   ;;  %s3166_s22 = smov 16  }
  0x32   : > { %2194 = dma.hbm_to_vmem [thread:$0]  (!%p2838_p11), %s3180_s2, 4096, %s2831_s16, [#allocation7], %s3165_s21, %s3165_s21, %s3166_s22  }
  0x33   : > { %s3182_s4 = sld [smem:[#allocation20_spill]] }
  0x39   : > { %s2510_s15 = scalar_lea.hbm %s3182_s4, 8192 }
  0x3a   : > { %p2511_p3 = scmp.ne.s32.totalorder %s3182_s4, %s2510_s15  ;;  %p2517_p4 = scmp.lt.u32.totalorder %s2510_s15, %s3182_s4 }
  0x3c   : > { %p2513_p6 = pnand %p2511_p3, %p2856_p0 }
  0x3e   : > { %p2514_p2 = pneg %p2513_p6 }
  0x40   : > { %p2519_p5 = pnand %p2517_p4, %p2514_p2 }
  0x42   : > { %2522 = shalt.err (!%p2519_p5)
}
  0x43   : > { %s2523_s16 = scalar_lea.vmem %s2846_s20, 8192  ;;  %p2531_p13 = scmp.lt.s32.totalorder %s2846_s20, %s2846_s20 }
  0x44   : > { %p2524_p7 = scmp.ne.s32.totalorder %s2846_s20, %s2523_s16  ;;  %p2532_p1 = scmp.lt.s32.totalorder %s2523_s16, %s2523_s16 }
  0x46   : > { %p2526_p9 = pnand %p2524_p7, %p2856_p0  ;;  %p2533_p3 = por %p2532_p1, %p2531_p13 }
  0x48   : > { %p2527_p10 = pneg %p2526_p9 }
  0x4a   : > { %p2534_p6 = pnand %p2533_p3, %p2527_p10 }
  0x4c   : > { %2537 = shalt.err (!%p2534_p6)
}
  0x4d   : > { %s2724_s12 = smov 128   ;;  %s2725_s7 = smov 8  }
  0x4e   : > { %2197 = dma.hbm_to_vmem [thread:$0]  (!%p2838_p11), %s3182_s4, 8192, %s2846_s20, [#allocation10], %s2724_s12, %s2724_s12, %s2725_s7  }
  0x4f   : > { %s2726_s24 = smov [#allocation11]   ;;  %s2538_s19 = scalar_lea.hbm %s3159_s6, 2048 }
  0x50   : > { %s293_s25 = sshll.u32 %s2726_s24, 4  ;;  %p2539_p2 = scmp.ne.s32.totalorder %s3159_s6, %s2538_s19  ;;  %s294_s25 = int_to_ptr.vmem [resolvable:$true] %s293_s25 }
  0x51   : > { %p2545_p7 = scmp.lt.u32.totalorder %s2538_s19, %s3159_s6 }
  0x52   : > { %p2541_p4 = pnand %p2539_p2, %p2856_p0 }
  0x54   : > { %p2542_p5 = pneg %p2541_p4 }
  0x56   : > { %p2547_p9 = pnand %p2545_p7, %p2542_p5 }
  0x58   : > { %2550 = shalt.err (!%p2547_p9)
}
  0x59   : > { %s2551_s20 = scalar_lea.vmem %s294_s25, 2048  ;;  %p2559_p3 = scmp.lt.s32.totalorder %s294_s25, %s294_s25 }
  0x5a   : > { %p2552_p10 = scmp.ne.s32.totalorder %s294_s25, %s2551_s20  ;;  %p2560_p6 = scmp.lt.s32.totalorder %s2551_s20, %s2551_s20 }
  0x5c   : > { %p2554_p13 = pnand %p2552_p10, %p2856_p0  ;;  %p2561_p8 = por %p2560_p6, %p2559_p3 }
  0x5e   : > { %p2555_p1 = pneg %p2554_p13 }
  0x60   : > { %p2562_p12 = pnand %p2561_p8, %p2555_p1 }
  0x62   : > { %2565 = shalt.err (!%p2562_p12)
}
  0x63   : > { %s3169_s21 = smov 64   ;;  %s3170_s2 = smov 4  }
  0x64   : > { %2200 = dma.hbm_to_vmem [thread:$0]  (!%p2838_p11), %s3159_s6, 2048, %s294_s25, [#allocation10], %s3169_s21, %s3169_s21, %s3170_s2  }
  0x65   : > { %s2925_s12 = sand.u32 1, %s2706_s29   ;;  %s35_s7 = sadd.s32 1, %s2714_s9 }
  0x66   : > { %s1928_s8 = sshll.u32 %s2925_s12, 5  ;;  %p36_p8 = scmp.ge.s32.totalorder %s35_s7, 2 }
  0x67   : > { %s2095_s23 = sshll.u32 %s2714_s9, 8  ;;  %s314_s24 = scalar_lea.vmem [#allocation3], %s1928_s8 }
  0x68   : > { %s324_s27 = sshll.u32 %s314_s24, 4  ;;  %s3207_s7 = smov (%p36_p8, %s35_s7), 0  ;;  %s2937_s27 = int_to_ptr.vmem [resolvable:$true] %s324_s27 }
  0x69   : > { %s3183_s0 = sld [smem:[#allocation18_spill]]  ;;  %s43_s25 = ssub.s32 %s2714_s9, %s3207_s7 }
  0x6a   : > { %p2941_p11 = scmp.eq.s32.totalorder %s43_s25, 0  ;;  %s311_s26 = scalar_lea.sflag [#allocation4], %s2925_s12 }
  0x6b   : > { %p3185_p0 = scmp.ne.s32.totalorder %s3179_s18, 0 }
  0x6d   : > { %p2568_p2 = pneg %p3185_p0 }
  0x6f   : > { %s2935_s19 = scalar_lea.hbm %s3183_s0, %s2095_s23  ;;  %s2571_s24 = scalar_lea.hbm %s3183_s0, 1024 }
  0x70   : > { %s2566_s22 = scalar_lea.hbm %s2935_s19, 512  ;;  %p2572_p7 = scmp.lt.u32.totalorder %s2935_s19, %s3183_s0 }
  0x71   : > { %p2567_p12 = scmp.ne.s32.totalorder %s2935_s19, %s2566_s22  ;;  %p2573_p9 = scmp.lt.u32.totalorder %s2571_s24, %s2566_s22 }
  0x72   : > { %p2575_p13 = scmp.lt.u32.totalorder %s2566_s22, %s2935_s19 }
  0x73   : > { %p2569_p4 = pnand %p2568_p2, %p2567_p12  ;;  %p2574_p10 = por %p2573_p9, %p2572_p7 }
  0x75   : > { %p2570_p5 = pneg %p2569_p4  ;;  %p2576_p1 = por %p2575_p13, %p2574_p10 }
  0x77   : > { %p2577_p3 = pnand %p2576_p1, %p2570_p5 }
  0x79   : > { %2580 = shalt.err (!%p2577_p3)
}
  0x7a   : > { %s2581_s25 = scalar_lea.vmem %s2937_s27, 512  ;;  %s2729_s8 = smov [#allocation3]  }
  0x7b   : > { %p2582_p6 = scmp.ne.s32.totalorder %s2937_s27, %s2581_s25  ;;  %s2586_s23 = sshll.u32 %s2729_s8, 4  ;;  %s2587_s23 = int_to_ptr.vmem [resolvable:$false] %s2586_s23 }
  0x7c   : > { %s2588_s17 = scalar_lea.vmem %s2587_s23, 1024  ;;  %p2589_p4 = scmp.lt.s32.totalorder %s2937_s27, %s2587_s23 }
  0x7d   : > { %p2584_p8 = pnand %p2582_p6, %p2568_p2  ;;  %p2590_p7 = scmp.lt.s32.totalorder %s2588_s17, %s2581_s25 }
  0x7f   : > { %p2585_p12 = pneg %p2584_p8  ;;  %p2591_p9 = por %p2590_p7, %p2589_p4 }
  0x81   : > { %p2592_p10 = pnand %p2591_p9, %p2585_p12 }
  0x83   : > { %2595 = shalt.err (!%p2592_p10)
}
  0x84   : > { %s2730_s22 = smov 512   ;;  %s3186_s24 = smov 16  }
  0x85   : > { %s3187_s15 = smov 256   ;;  %s3188_s25 = sadd.s32 1, %s2706_s29 }
  0x86   : > { %2204 = dma.hbm_to_vmem [thread:$0]  (!%p3185_p0), %s2935_s19, 512, %s2937_s27, %s311_s26, %s2730_s22, %s3187_s15, %s3186_s24  }
  0x87   : > { %s2981_s8 = scalar_select %p2941_p11, %s2706_s29, %s3188_s25  }
  0x88   : > { %s1931_s23 = sshll.u32 %s2925_s12, 8  ;;  %s2096_s17 = sshll.u32 %s2714_s9, 12 }
  0x89   : > { %s2988_s20 = scalar_lea.hbm %s3154_s1, %s2096_s17  ;;  %s338_s0 = scalar_lea.vmem [#allocation6], %s1931_s23 }
  0x8a   : > { %s345_s4 = sshll.u32 %s338_s0, 4  ;;  %s3189_s27 = sand.u32 1, %s2718_s10   ;;  %s2990_s4 = int_to_ptr.vmem [resolvable:$true] %s345_s4 }
  0x8b   : > { %s2994_s19 = scalar_lea.sflag [#allocation7], %s3189_s27  ;;  %s2596_s16 = scalar_lea.hbm %s2988_s20, 4096 }
  0x8c   : > { %p2597_p11 = scmp.ne.s32.totalorder %s2988_s20, %s2596_s16  ;;  %s2601_s12 = scalar_lea.hbm %s3154_s1, 8192 }
  0x8d   : > { %p2602_p1 = scmp.lt.u32.totalorder %s2988_s20, %s3154_s1  ;;  %p2603_p3 = scmp.lt.u32.totalorder %s2601_s12, %s2596_s16 }
  0x8e   : > { %p2599_p5 = pnand %p2597_p11, %p2568_p2  ;;  %p2605_p8 = scmp.lt.u32.totalorder %s2596_s16, %s2988_s20 }
  0x8f   : > { %p2604_p6 = por %p2603_p3, %p2602_p1 }
  0x90   : > { %p2600_p13 = pneg %p2599_p5 }
  0x91   : > { %p2606_p12 = por %p2605_p8, %p2604_p6 }
  0x93   : > { %p2607_p4 = pnand %p2606_p12, %p2600_p13 }
  0x95   : > { %2610 = shalt.err (!%p2607_p4)
}
  0x96   : > { %s2611_s0 = scalar_lea.vmem %s2990_s4, 4096  ;;  %s2731_s24 = smov [#allocation6]  }
  0x97   : > { %p2612_p7 = scmp.ne.s32.totalorder %s2990_s4, %s2611_s0  ;;  %s2616_s15 = sshll.u32 %s2731_s24, 4  ;;  %s2617_s15 = int_to_ptr.vmem [resolvable:$false] %s2616_s15 }
  0x98   : > { %s2618_s25 = scalar_lea.vmem %s2617_s15, 8192  ;;  %p2619_p11 = scmp.lt.s32.totalorder %s2990_s4, %s2617_s15 }
  0x99   : > { %p2614_p9 = pnand %p2612_p7, %p2568_p2  ;;  %p2620_p5 = scmp.lt.s32.totalorder %s2618_s25, %s2611_s0 }
  0x9b   : > { %p2615_p10 = pneg %p2614_p9  ;;  %p2621_p1 = por %p2620_p5, %p2619_p11 }
  0x9d   : > { %p2622_p3 = pnand %p2621_p1, %p2615_p10 }
  0x9f   : > { %2625 = shalt.err (!%p2622_p3)
}
  0xa0   : > { %s3190_s23 = smov 4   ;;  %s3191_s17 = smov 64  }
  0xa1   : > { %2207 = dma.hbm_to_vmem [thread:$0]  (!%p3185_p0), %s2988_s20, 4096, %s2990_s4, %s2994_s19, %s3191_s17, %s3191_s17, %s3190_s23  }
  0xa2   : > { %p3192_p2 = scmp.ne.s32.totalorder %s3177_s14, 0 }
  0xa3   : > { %s359_s27 = sand.u32 (!%p3192_p2), 1, %s2702_s28   ;;  %p3193_p13 = scmp.ne.s32.totalorder (!%p3192_p2), %s3176_s13, 0 }
  0xa4   : > { %357 = sbr.rel (%p3192_p2) target bundleno = 1377 (0x561), region = 52  ;;  %s1935_s16 = sshll.u32 (!%p3192_p2), %s359_s27, 5 }
  0xa5   : > { %s360_s21 = scalar_lea.sflag (!%p3192_p2), [#allocation4], %s359_s27  ;;  %s3026_s2 = scalar_lea.vmem (!%p3192_p2), [#allocation3], %s1935_s16 }
  0xab   : > { %2677 = dma.done.wait (%p3193_p13), %s360_s21, 512  }
  0xac   : > { %2679 = vsyncadd (%p3193_p13), %s360_s21, 4294966784  ;;  %s368_s18 = sand.u32 1, %s2811_s11   ;;  %s1936_s12 = sshll.u32 %s359_s27, 8 }
  0xad   : > { %s369_s4 = scalar_lea.sflag [#allocation7], %s368_s18  ;;  %s3033_s20 = scalar_lea.vmem [#allocation6], %s1936_s12 }
  0xae   : > { %2681 = dma.done.wait (%p3193_p13), %s369_s4, 4096  }
  0xaf   : > { %2683 = vsyncadd (%p3193_p13), %s369_s4, 4294963200  ;;  %p3194_p0 = scmp.eq.s32.totalorder %s2811_s11, 0 }
  0xb1   : > { %2685 = dma.done.wait (%p3194_p0), [#allocation7], 4096   ;;  %p3195_p6 = pmov %p3194_p0 }
  0xb2   : > { %p3196_p8 = pmov %p3194_p0 }
  0xb3   : > { %2687 = vsyncadd (%p3195_p6), [#allocation7], 4294963200 }
  0xb4   : > { %2689 = dma.done.wait (%p3196_p8), [#allocation10], 10240   ;;  %p3197_p12 = pmov %p3194_p0 }
  0xb5   : > { %p1940_p4 = scmp.ne.s32.totalorder %s2710_s30, 0 }
  0xb6   : > { %2691 = vsyncadd (%p3197_p12), [#allocation10], 4294957056  ;;  %v2732_v0 = vmov (!%p1940_p4), 0.0  }
  0xb7   : > { %425 = sbr.rel (%p1940_p4) target bundleno = 190 (0xbe), region = 76  ;;  %426 = vst [vmem:[#allocation2] sm:$0xff] (!%p1940_p4), %v2732_v0  ;;  %427 = vst [vmem:[#allocation2 + $0x8] sm:$0xff] (!%p1940_p4), %v2732_v0 }
  0xbe PF: > { %v2280_v1 = vld [vmem:[%s3033_s20 + $0x40] sm:$0xff]   ;;  %v2284_v5 = vld [vmem:[%s3033_s20 + $0x48] sm:$0xff]   ;;  %v2288_v9 = vld [vmem:[%s3033_s20 + $0x50] sm:$0xff]   ;;  %p1977_p7 = scmp.ne.s32.totalorder %s2710_s30, 1 }
  0xbf   : > { %v2281_v2 = vld [vmem:[%s3033_s20 + $0xc0] sm:$0xff]   ;;  %2097 = vmatprep.subr.bf16.mxu0 %v2280_v1  ;;  %v2285_v6 = vld [vmem:[%s3033_s20 + $0xc8] sm:$0xff]   ;;  %v2289_v10 = vld [vmem:[%s3033_s20 + $0xd0] sm:$0xff]   ;;  %v2733_v57 = vmov (!%p1977_p7), 0   ;;  %s3198_s0 = sld [smem:[#allocation21_spill]] (!%p1977_p7) }
  0xc0   : > { %v2282_v3 = vld [vmem:[%s3033_s20] sm:$0xff]   ;;  %2119 = vmatprep.subr.bf16.mxu1 %v2281_v2  ;;  %v2286_v7 = vld [vmem:[%s3033_s20 + $0x8] sm:$0xff]   ;;  %v2290_v11 = vld [vmem:[%s3033_s20 + $0x10] sm:$0xff]  }
  0xc1   : > { %v2283_v4 = vld [vmem:[%s3033_s20 + $0x80] sm:$0xff]   ;;  %2098 = vmatpush3.bf16.msra.mxu0 %v2282_v3  ;;  %v2287_v8 = vld [vmem:[%s3033_s20 + $0x88] sm:$0xff]   ;;  %v2291_v12 = vld [vmem:[%s3033_s20 + $0x90] sm:$0xff]  }
  0xc2   : > { %2120 = vmatpush3.bf16.msra.mxu1 %v2283_v4  ;;  %2099 = vmatprep.subr.bf16.mxu0 %v2284_v5  ;;  %v2292_v13 = vld [vmem:[%s3033_s20 + $0x58] sm:$0xff]   ;;  %v2296_v17 = vld [vmem:[%s3033_s20 + $0x60] sm:$0xff]   ;;  %v2300_v21 = vld [vmem:[%s3033_s20 + $0x68] sm:$0xff]  }
  0xc3   : > { %2121 = vmatprep.subr.bf16.mxu1 %v2285_v6  ;;  %v2293_v14 = vld [vmem:[%s3033_s20 + $0xd8] sm:$0xff]   ;;  %v2297_v18 = vld [vmem:[%s3033_s20 + $0xe0] sm:$0xff]   ;;  %v2301_v22 = vld [vmem:[%s3033_s20 + $0xe8] sm:$0xff]  }
  0xc4   : > { %v2294_v15 = vld [vmem:[%s3033_s20 + $0x18] sm:$0xff]   ;;  %v2298_v19 = vld [vmem:[%s3033_s20 + $0x20] sm:$0xff]   ;;  %v2302_v23 = vld [vmem:[%s3033_s20 + $0x28] sm:$0xff]  }
  0xc5   : > { %2100 = vmatpush3.bf16.msra.mxu0 %v2286_v7  ;;  %v2295_v16 = vld [vmem:[%s3033_s20 + $0x98] sm:$0xff]   ;;  %v2299_v20 = vld [vmem:[%s3033_s20 + $0xa0] sm:$0xff]   ;;  %v2303_v24 = vld [vmem:[%s3033_s20 + $0xa8] sm:$0xff]  }
  0xc6   : > { %2122 = vmatpush3.bf16.msra.mxu1 %v2287_v8  ;;  %2101 = vmatprep.subr.bf16.mxu0 %v2288_v9  ;;  %v2304_v25 = vld [vmem:[%s3033_s20 + $0x70] sm:$0xff]   ;;  %v2308_v29 = vld [vmem:[%s3033_s20 + $0x78] sm:$0xff]   ;;  %v2366_v6 = vld [vmem:[#allocation9 + $0x4] ss:$8 sps:$4 sm:$0xff] (!%p1977_p7)  }
  0xc7   : > { %2123 = vmatprep.subr.bf16.mxu1 %v2289_v10  ;;  %v2305_v26 = vld [vmem:[%s3033_s20 + $0xf0] sm:$0xff]   ;;  %v2309_v30 = vld [vmem:[%s3033_s20 + $0xf8] sm:$0xff]   ;;  %v2368_v7 = vld [vmem:[#allocation9] ss:$8 sps:$4 sm:$0xff] (!%p1977_p7)  }
  0xc8   : > { %v2306_v27 = vld [vmem:[%s3033_s20 + $0x30] sm:$0xff]   ;;  %v2310_v31 = vld [vmem:[%s3033_s20 + $0x38] sm:$0xff]  }
  0xc9   : > { %2102 = vmatpush3.bf16.msra.mxu0 %v2290_v11  ;;  %v2307_v28 = vld [vmem:[%s3033_s20 + $0xb0] sm:$0xff]   ;;  %v2311_v32 = vld [vmem:[%s3033_s20 + $0xb8] sm:$0xff]  }
  0xca   : > { %2124 = vmatpush3.bf16.msra.mxu1 %v2291_v12  ;;  %2103 = vmatprep.subr.bf16.mxu0 %v2292_v13  ;;  %v2312_v33 = vld [vmem:[%s3026_s2] ss:$16 sps:$4 sm:$0xff]   ;;  %v2314_v34 = vld [vmem:[%s3026_s2 + $0x4] ss:$16 sps:$4 sm:$0xff]   ;;  %v2315_v35 = vld [vmem:[%s3026_s2 + $0x8] ss:$16 sps:$4 sm:$0xff]  }
  0xcb   : > { %2125 = vmatprep.subr.bf16.mxu1 %v2293_v14  ;;  %v2317_v36 = vld [vmem:[%s3026_s2 + $0xc] ss:$16 sps:$4 sm:$0xff]   ;;  %742 = vmatprep.mubr.bf16.mxu0 %v2314_v34  ;;  %v428_v46 = vld [vmem:[#allocation2] sm:$0xff] }
  0xcc   : > { %783 = vmatprep.mubr.bf16.mxu1 %v2317_v36  ;;  %v429_v51 = vld [vmem:[#allocation2 + $0x8] sm:$0xff]  ;;  %v2318_v55 = vld [vmem:[#allocation8 + $0x4] ss:$16 sps:$4 sm:$0xff] (!%p1977_p7)   ;;  %v2320_v56 = vld [vmem:[#allocation8] ss:$16 sps:$4 sm:$0xff] (!%p1977_p7)  }
  0xcd   : > { %2104 = vmatpush3.bf16.msra.mxu0 %v2294_v15  ;;  %v2321_v58 = vld [vmem:[#allocation8 + $0x24] ss:$16 sps:$4 sm:$0xff] (!%p1977_p7)   ;;  %v2323_v59 = vld [vmem:[#allocation8 + $0x20] ss:$16 sps:$4 sm:$0xff] (!%p1977_p7)   ;;  %v2344_v15 = vld [vmem:[#allocation8 + $0xc] ss:$16 sps:$4 sm:$0xff] (!%p1977_p7)  }
  0xce   : > { %2126 = vmatpush3.bf16.msra.mxu1 %v2295_v16  ;;  %2105 = vmatprep.subr.bf16.mxu0 %v2296_v17  ;;  %v2324_v60 = vld [vmem:[#allocation8 + $0x44] ss:$16 sps:$4 sm:$0xff] (!%p1977_p7)   ;;  %v2326_v61 = vld [vmem:[#allocation8 + $0x40] ss:$16 sps:$4 sm:$0xff] (!%p1977_p7)   ;;  %v2359_v36 = vld [vmem:[#allocation8 + $0xac] ss:$16 sps:$4 sm:$0xff] (!%p1977_p7)  }
  0xcf   : > { %2127 = vmatprep.subr.bf16.mxu1 %v2297_v18  ;;  %v2327_v62 = vld [vmem:[#allocation8 + $0x64] ss:$16 sps:$4 sm:$0xff] (!%p1977_p7)   ;;  %v2329_v63 = vld [vmem:[#allocation8 + $0x60] ss:$16 sps:$4 sm:$0xff] (!%p1977_p7)  }
  0xd0   : > { %v2330_v0 = vld [vmem:[#allocation8 + $0x84] ss:$16 sps:$4 sm:$0xff] (!%p1977_p7)   ;;  %v2332_v1 = vld [vmem:[#allocation8 + $0x80] ss:$16 sps:$4 sm:$0xff] (!%p1977_p7)  }
  0xd1   : > { %2106 = vmatpush3.bf16.msra.mxu0 %v2298_v19  ;;  %v2333_v2 = vld [vmem:[#allocation8 + $0xa4] ss:$16 sps:$4 sm:$0xff] (!%p1977_p7)   ;;  %v2335_v3 = vld [vmem:[#allocation8 + $0xa0] ss:$16 sps:$4 sm:$0xff] (!%p1977_p7)   ;;  %v2342_v19 = vld [vmem:[#allocation8 + $0x8] ss:$16 sps:$4 sm:$0xff] (!%p1977_p7)  }
  0xd2   : > { %2128 = vmatpush3.bf16.msra.mxu1 %v2299_v20  ;;  %2107 = vmatprep.subr.bf16.mxu0 %v2300_v21  ;;  %v2336_v4 = vld [vmem:[#allocation8 + $0xc4] ss:$16 sps:$4 sm:$0xff] (!%p1977_p7)   ;;  %v2338_v5 = vld [vmem:[#allocation8 + $0xc0] ss:$16 sps:$4 sm:$0xff] (!%p1977_p7)   ;;  %v2347_v20 = vld [vmem:[#allocation8 + $0x2c] ss:$16 sps:$4 sm:$0xff] (!%p1977_p7)  }
  0xd3   : > { %2129 = vmatprep.subr.bf16.mxu1 %v2301_v22  ;;  %v2339_v8 = vld [vmem:[#allocation8 + $0xe4] ss:$16 sps:$4 sm:$0xff] (!%p1977_p7)   ;;  %v2341_v10 = vld [vmem:[#allocation8 + $0xe0] ss:$16 sps:$4 sm:$0xff] (!%p1977_p7)  }
  0xd4   : > { %v2369_v9 = vld [vmem:[#allocation9 + $0x14] ss:$8 sps:$4 sm:$0xff] (!%p1977_p7)   ;;  %v2371_v12 = vld [vmem:[#allocation9 + $0x10] ss:$8 sps:$4 sm:$0xff] (!%p1977_p7)   ;;  %v2372_v13 = vld [vmem:[#allocation9 + $0x24] ss:$8 sps:$4 sm:$0xff] (!%p1977_p7)  }
  0xd5   : > { %2108 = vmatpush3.bf16.msra.mxu0 %v2302_v23  ;;  %v2374_v16 = vld [vmem:[#allocation9 + $0x20] ss:$8 sps:$4 sm:$0xff] (!%p1977_p7)   ;;  %v2375_v18 = vld [vmem:[#allocation9 + $0x34] ss:$8 sps:$4 sm:$0xff] (!%p1977_p7)   ;;  %v2377_v21 = vld [vmem:[#allocation9 + $0x30] ss:$8 sps:$4 sm:$0xff] (!%p1977_p7)  }
  0xd6   : > { %2130 = vmatpush3.bf16.msra.mxu1 %v2303_v24  ;;  %2109 = vmatprep.subr.bf16.mxu0 %v2304_v25  ;;  %v2378_v22 = vld [vmem:[#allocation9 + $0x44] ss:$8 sps:$4 sm:$0xff] (!%p1977_p7)   ;;  %v2345_v23 = vld [vmem:[#allocation8 + $0x28] ss:$16 sps:$4 sm:$0xff] (!%p1977_p7)   ;;  %v2387_v34 = vld [vmem:[#allocation9 + $0x74] ss:$8 sps:$4 sm:$0xff] (!%p1977_p7)  }
  0xd7   : > { %2131 = vmatprep.subr.bf16.mxu1 %v2305_v26  ;;  %v2350_v24 = vld [vmem:[#allocation8 + $0x4c] ss:$16 sps:$4 sm:$0xff] (!%p1977_p7)   ;;  %v2380_v25 = vld [vmem:[#allocation9 + $0x40] ss:$8 sps:$4 sm:$0xff] (!%p1977_p7)  }
  0xd8   : > { %v2381_v26 = vld [vmem:[#allocation9 + $0x54] ss:$8 sps:$4 sm:$0xff] (!%p1977_p7)  }
  0xd9   : > { %2110 = vmatpush3.bf16.msra.mxu0 %v2306_v27  ;;  %v2348_v27 = vld [vmem:[#allocation8 + $0x48] ss:$16 sps:$4 sm:$0xff] (!%p1977_p7)  }
  0xda   : > { %2132 = vmatpush3.bf16.msra.mxu1 %v2307_v28  ;;  %2111 = vmatprep.subr.bf16.mxu0 %v2308_v29  ;;  %v2353_v28 = vld [vmem:[#allocation8 + $0x6c] ss:$16 sps:$4 sm:$0xff] (!%p1977_p7)   ;;  %v2383_v29 = vld [vmem:[#allocation9 + $0x50] ss:$8 sps:$4 sm:$0xff] (!%p1977_p7)  }
  0xdb   : > { %2133 = vmatprep.subr.bf16.mxu1 %v2309_v30  ;;  %v2384_v30 = vld [vmem:[#allocation9 + $0x64] ss:$8 sps:$4 sm:$0xff] (!%p1977_p7)  }
  0xdd   : > { %2112 = vmatpush3.bf16.msra.mxu0 %v2310_v31  ;;  %v2351_v31 = vld [vmem:[#allocation8 + $0x68] ss:$16 sps:$4 sm:$0xff] (!%p1977_p7)  }
  0xde   : > { %2134 = vmatpush3.bf16.msra.mxu1 %v2311_v32  ;;  %1511 = vmatprep.subr.bf16.mxu0 (!%p1977_p7), %v2366_v6  ;;  %v2356_v32 = vld [vmem:[#allocation8 + $0x8c] ss:$16 sps:$4 sm:$0xff] (!%p1977_p7)  }
  0xdf   : > { %1017 = vmatprep.subr.bf16.mxu1 (!%p1977_p7), %v2318_v55  ;;  %v2408_v55 = vld [vmem:[#allocation9 + $0xe4] ss:$8 sps:$4 sm:$0xff] (!%p1977_p7)  }
  0xe0   : > { %743 = vmatmul.mubr.bf16.vlgmr.msra.gmra.mrb[0].mxu0 %v2312_v33  ;;  %v2386_v33 = vld [vmem:[#allocation9 + $0x60] ss:$8 sps:$4 sm:$0xff] (!%p1977_p7)  }
  0xe1   : > { %784 = vmatmul.mubr.bf16.vlgmr.msra.gmra.mrb[0].mxu1 %v2315_v35  ;;  %1512 = vmatpush1.bf16.msra.mxu0 (!%p1977_p7), %v2368_v7  ;;  %v2354_v35 = vld [vmem:[#allocation8 + $0x88] ss:$16 sps:$4 sm:$0xff] (!%p1977_p7)  }
  0xe2   : > { %1049 = vmatprep.mubr.bf16.mxu1 (!%p1977_p7), %v2733_v57  ;;  %1018 = vmatpush1.bf16.msra.mxu1 (!%p1977_p7), %v2320_v56  ;;  %v2410_v56 = vld [vmem:[#allocation9 + $0xe0] ss:$8 sps:$4 sm:$0xff] (!%p1977_p7)  }
  0xe3   : > { %1019 = vmatprep.subr.bf16.mxu1 (!%p1977_p7), %v2321_v58  ;;  %1513 = vmatprep.subr.bf16.mxu0 (!%p1977_p7), %v2369_v9  ;;  %v2413_v58 = vld [vmem:[#allocation9 + $0xf0] ss:$8 sps:$4 sm:$0xff] (!%p1977_p7)  }
  0xe5   : > { %1514 = vmatpush1.bf16.msra.mxu0 (!%p1977_p7), %v2371_v12 }
  0xe6   : > { %1020 = vmatpush1.bf16.msra.mxu1 (!%p1977_p7), %v2323_v59  ;;  %1515 = vmatprep.subr.bf16.mxu0 (!%p1977_p7), %v2372_v13  ;;  %v2416_v59 = vld [vmem:[#allocation9 + $0x104] ss:$8 sps:$4 sm:$0xff] (!%p1977_p7)  }
  0xe7   : > { %1021 = vmatprep.subr.bf16.mxu1 (!%p1977_p7), %v2324_v60  ;;  %v837_v60 = vlaneseq (!%p1977_p7) }
  0xe9   : > { %1516 = vmatpush1.bf16.msra.mxu0 (!%p1977_p7), %v2374_v16 }
  0xea   : > { %1022 = vmatpush1.bf16.msra.mxu1 (!%p1977_p7), %v2326_v61  ;;  %1517 = vmatprep.subr.bf16.mxu0 (!%p1977_p7), %v2375_v18  ;;  %v3089_v61 = vshrl.u32 (!%p1977_p7), %v837_v60, 7  ;;  %v2419_v18 = vld [vmem:[#allocation9 + $0x114] ss:$8 sps:$4 sm:$0xff] (!%p1977_p7)  }
  0xeb   : > { %1023 = vmatprep.subr.bf16.mxu1 (!%p1977_p7), %v2327_v62  ;;  %v2455_v60 = vld [vmem:[#allocation9 + $0x1d4] ss:$8 sps:$4 sm:$0xff] (!%p1977_p7)  }
  0xec   : > { %v839_v62 = vsub.s32 (!%p1977_p7), 0, %v3089_v61 }
  0xed   : > { %1518 = vmatpush1.bf16.msra.mxu0 (!%p1977_p7), %v2377_v21  ;;  %v2420_v21 = vld [vmem:[#allocation9 + $0x120] ss:$8 sps:$4 sm:$0xff] (!%p1977_p7)  }
  0xee   : > { %1024 = vmatpush1.bf16.msra.mxu1 (!%p1977_p7), %v2329_v63  ;;  %1519 = vmatprep.subr.bf16.mxu0 (!%p1977_p7), %v2378_v22  ;;  %v835_v63 = vld [vmem:[%s3156_s3] sm:$0xf] (!%p1977_p7)  ;;  %v2425_v22 = vld [vmem:[#allocation9 + $0x134] ss:$8 sps:$4 sm:$0xff] (!%p1977_p7)  }
  0xef   : > { %1025 = vmatprep.subr.bf16.mxu1 (!%p1977_p7), %v2330_v0  ;;  %v843_v0 = vsub.s32 (!%p1977_p7), 1, %v3089_v61 }
  0xf1   : > { %1520 = vmatpush1.bf16.msra.mxu0 (!%p1977_p7), %v2380_v25  ;;  %v2426_v25 = vld [vmem:[#allocation9 + $0x140] ss:$8 sps:$4 sm:$0xff] (!%p1977_p7)  }
  0xf2   : > { %1026 = vmatpush1.bf16.msra.mxu1 (!%p1977_p7), %v2332_v1  ;;  %1521 = vmatprep.subr.bf16.mxu0 (!%p1977_p7), %v2381_v26  ;;  %v840_v1 = vrot.slane (!%p1977_p7), %v835_v63, %v839_v62  ;;  %v2431_v26 = vld [vmem:[#allocation9 + $0x154] ss:$8 sps:$4 sm:$0xff] (!%p1977_p7)  }
  0xf3   : > { %1027 = vmatprep.subr.bf16.mxu1 (!%p1977_p7), %v2333_v2  ;;  %v844_v2 = vrot.slane (!%p1977_p7), %v835_v63, %v843_v0 }
  0xf5   : > { %1522 = vmatpush1.bf16.msra.mxu0 (!%p1977_p7), %v2383_v29  ;;  %v2429_v29 = vld [vmem:[#allocation9 + $0x150] ss:$8 sps:$4 sm:$0xff] (!%p1977_p7)  }
  0xf6   : > { %1028 = vmatpush1.bf16.msra.mxu1 (!%p1977_p7), %v2335_v3  ;;  %1523 = vmatprep.subr.bf16.mxu0 (!%p1977_p7), %v2384_v30  ;;  %v2434_v30 = vld [vmem:[#allocation9 + $0x164] ss:$8 sps:$4 sm:$0xff] (!%p1977_p7)  }
  0xf7   : > { %1029 = vmatprep.subr.bf16.mxu1 (!%p1977_p7), %v2336_v4 }
  0xf9   : > { %1524 = vmatpush1.bf16.msra.mxu0 (!%p1977_p7), %v2386_v33  ;;  %v2432_v33 = vld [vmem:[#allocation9 + $0x160] ss:$8 sps:$4 sm:$0xff] (!%p1977_p7)  }
  0xfa   : > { %1030 = vmatpush1.bf16.msra.mxu1 (!%p1977_p7), %v2338_v5  ;;  %1525 = vmatprep.subr.bf16.mxu0 (!%p1977_p7), %v2387_v34 }
  0xfb   : > { %1031 = vmatprep.subr.bf16.mxu1 (!%p1977_p7), %v2339_v8 }
  0xfe   : > { %1032 = vmatpush1.bf16.msra.mxu1 (!%p1977_p7), %v2341_v10 }
  0xff   : > { %1060 = vmatprep.subr.bf16.mxu1 (!%p1977_p7), %v2344_v15 }
 0x1b3   : > { %v2113_v37 = vpop.f32.mrb[0].mxu0 }
 0x1b4   : > { %v2135_v38 = vpop.f32.mrb[0].mxu1  ;;  %v2114_v39 = vpop.f32.mrb[1].mxu0 }
 0x1b5   : > { %v2115_v40 = vadd.f32 %v2114_v39, %v2113_v37  ;;  %v2136_v41 = vpop.f32.mrb[1].mxu1  ;;  %v2116_v42 = vpop.f32.mrb[2].mxu0  ;;  %v2389_v37 = vld [vmem:[#allocation9 + $0x70] ss:$8 sps:$4 sm:$0xff] (!%p1977_p7)  }
 0x1b6   : > { %v2137_v43 = vadd.f32 %v2136_v41, %v2135_v38  ;;  %v2138_v44 = vpop.f32.mrb[2].mxu1  ;;  %v2117_v45 = vpop.f32.mrb[3].mxu0  ;;  %v2390_v38 = vld [vmem:[#allocation9 + $0x84] ss:$8 sps:$4 sm:$0xff] (!%p1977_p7)   ;;  %v2357_v39 = vld [vmem:[#allocation8 + $0xa8] ss:$16 sps:$4 sm:$0xff] (!%p1977_p7)   ;;  %1526 = vmatpush1.bf16.msra.mxu0 (!%p1977_p7), %v2389_v37 }
 0x1b7   : > { %v2118_v47 = vadd.f32 %v2117_v45, %v2116_v42  ;;  %v2139_v48 = vpop.f32.mrb[3].mxu1  ;;  %v2392_v41 = vld [vmem:[#allocation9 + $0x80] ss:$8 sps:$4 sm:$0xff] (!%p1977_p7)   ;;  %v2393_v42 = vld [vmem:[#allocation9 + $0x94] ss:$8 sps:$4 sm:$0xff] (!%p1977_p7)   ;;  %1527 = vmatprep.subr.bf16.mxu0 (!%p1977_p7), %v2390_v38 }
 0x1b8   : > { %v786_v49 = vadd.f32 %v2137_v43, %v2115_v40  ;;  %v2140_v50 = vadd.f32 %v2139_v48, %v2138_v44  ;;  %799 = sbr.rel (%p1977_p7) target bundleno = 1345 (0x541), region = 80  ;;  %v2362_v40 = vld [vmem:[#allocation8 + $0xcc] ss:$16 sps:$4 sm:$0xff] (!%p1977_p7)   ;;  %v2360_v43 = vld [vmem:[#allocation8 + $0xc8] ss:$16 sps:$4 sm:$0xff] (!%p1977_p7)  }
 0x1b9   : > { %v2365_v44 = vld [vmem:[#allocation8 + $0xec] ss:$16 sps:$4 sm:$0xff] (!%p1977_p7)   ;;  %v2395_v45 = vld [vmem:[#allocation9 + $0x90] ss:$8 sps:$4 sm:$0xff] (!%p1977_p7)   ;;  %v2398_v48 = vld [vmem:[#allocation9 + $0xa0] ss:$8 sps:$4 sm:$0xff] (!%p1977_p7)  }
 0x1ba   : > { %v792_v52 = vadd.f32 %v786_v49, %v428_v46  ;;  %v789_v53 = vadd.f32 %v2140_v50, %v2118_v47  ;;  %v2396_v46 = vld [vmem:[#allocation9 + $0xa4] ss:$8 sps:$4 sm:$0xff] (!%p1977_p7)   ;;  %v2363_v47 = vld [vmem:[#allocation8 + $0xe8] ss:$16 sps:$4 sm:$0xff] (!%p1977_p7)   ;;  %1528 = vmatpush1.bf16.msra.mxu0 (!%p1977_p7), %v2392_v41  ;;  %v2399_v49 = vld [vmem:[#allocation9 + $0xb4] ss:$8 sps:$4 sm:$0xff] (!%p1977_p7)  }
 0x1bb   : > { %1529 = vmatprep.subr.bf16.mxu0 (!%p1977_p7), %v2393_v42  ;;  %v2401_v50 = vld [vmem:[#allocation9 + $0xb0] ss:$8 sps:$4 sm:$0xff] (!%p1977_p7)  }
 0x1bc   : > { %794 = vst [vmem:[#allocation2] sm:$0xff] %v792_v52  ;;  %v793_v54 = vadd.f32 %v789_v53, %v429_v51  ;;  %v2402_v51 = vld [vmem:[#allocation9 + $0xc4] ss:$8 sps:$4 sm:$0xff] (!%p1977_p7)   ;;  %v2404_v52 = vld [vmem:[#allocation9 + $0xc0] ss:$8 sps:$4 sm:$0xff] (!%p1977_p7)  }
 0x1bd   : > { %v2405_v53 = vld [vmem:[#allocation9 + $0xd4] ss:$8 sps:$4 sm:$0xff] (!%p1977_p7)  }
 0x1be   : > { %795 = vst [vmem:[#allocation2 + $0x8] sm:$0xff] %v793_v54  ;;  %1530 = vmatpush1.bf16.msra.mxu0 (!%p1977_p7), %v2395_v45  ;;  %v2407_v54 = vld [vmem:[#allocation9 + $0xd0] ss:$8 sps:$4 sm:$0xff] (!%p1977_p7)  }
 0x1bf   : > { %1531 = vmatprep.subr.bf16.mxu0 %v2396_v46  ;;  %v2440_v46 = vld [vmem:[#allocation9 + $0x184] ss:$8 sps:$4 sm:$0xff]  }
 0x1c2   : > { %1532 = vmatpush1.bf16.msra.mxu0 %v2398_v48 }
 0x1c3   : > { %v800_v11 = vld [vmem:[#allocation2] sm:$0xff]  ;;  %1533 = vmatprep.subr.bf16.mxu0 %v2399_v49 }
 0x1c5   : > { %v801_v14 = vld [vmem:[#allocation2 + $0x8] sm:$0xff] }
 0x1c6   : > { %v3085_v17 = vpack.c.bf16 %v801_v14, %v800_v11  ;;  %1534 = vmatpush1.bf16.msra.mxu0 %v2401_v50  ;;  %v2438_v50 = vld [vmem:[#allocation9 + $0x180] ss:$8 sps:$4 sm:$0xff]  }
 0x1c7   : > { %1535 = vmatprep.subr.bf16.mxu0 %v2402_v51 }
 0x1c8   : > { %1050 = vmatmul.mubr.bf16.vlgmr.msra.gmra.mrb[0].mxu1 %v3085_v17 }
 0x1c9   : > { %1061 = vmatpush1.bf16.msra.mxu1 %v2342_v19  ;;  %1092 = vmatprep.mubr.bf16.mxu1 %v2733_v57  ;;  %v2411_v57 = vld [vmem:[#allocation9 + $0xf4] ss:$8 sps:$4 sm:$0xff]   ;;  %v2417_v19 = vld [vmem:[#allocation9 + $0x110] ss:$8 sps:$4 sm:$0xff]  }
 0x1ca   : > { %1062 = vmatprep.subr.bf16.mxu1 %v2347_v20  ;;  %1536 = vmatpush1.bf16.msra.mxu0 %v2404_v52  ;;  %v2422_v20 = vld [vmem:[#allocation9 + $0x124] ss:$8 sps:$4 sm:$0xff]   ;;  %v2443_v52 = vld [vmem:[#allocation9 + $0x194] ss:$8 sps:$4 sm:$0xff]  }
 0x1cb   : > { %1537 = vmatprep.subr.bf16.mxu0 %v2405_v53  ;;  %v2441_v53 = vld [vmem:[#allocation9 + $0x190] ss:$8 sps:$4 sm:$0xff]  }
 0x1cd   : > { %1063 = vmatpush1.bf16.msra.mxu1 %v2345_v23  ;;  %v2423_v23 = vld [vmem:[#allocation9 + $0x130] ss:$8 sps:$4 sm:$0xff]  }
 0x1ce   : > { %1064 = vmatprep.subr.bf16.mxu1 %v2350_v24  ;;  %1538 = vmatpush1.bf16.msra.mxu0 %v2407_v54  ;;  %v2428_v24 = vld [vmem:[#allocation9 + $0x144] ss:$8 sps:$4 sm:$0xff]  }
 0x1cf   : > { %1539 = vmatprep.subr.bf16.mxu0 %v2408_v55  ;;  %v2446_v54 = vld [vmem:[#allocation9 + $0x1a4] ss:$8 sps:$4 sm:$0xff]   ;;  %v2444_v55 = vld [vmem:[#allocation9 + $0x1a0] ss:$8 sps:$4 sm:$0xff]  }
 0x1d1   : > { %1065 = vmatpush1.bf16.msra.mxu1 %v2348_v27  ;;  %v847_v27 = vsub.s32 2, %v3089_v61 }
 0x1d2   : > { %1066 = vmatprep.subr.bf16.mxu1 %v2353_v28  ;;  %1540 = vmatpush1.bf16.msra.mxu0 %v2410_v56  ;;  %v851_v28 = vsub.s32 3, %v3089_v61  ;;  %v2449_v56 = vld [vmem:[#allocation9 + $0x1b4] ss:$8 sps:$4 sm:$0xff]   ;;  %v2470_v61 = vld [vmem:[#allocation11 + $0x60] sm:$0xff]  }
 0x1d3   : > { %1541 = vmatprep.subr.bf16.mxu0 %v2411_v57  ;;  %v2447_v57 = vld [vmem:[#allocation9 + $0x1b0] ss:$8 sps:$4 sm:$0xff]  }
 0x1d5   : > { %1067 = vmatpush1.bf16.msra.mxu1 %v2351_v31  ;;  %v848_v31 = vrot.slane %v835_v63, %v847_v27 }
 0x1d6   : > { %1068 = vmatprep.subr.bf16.mxu1 %v2356_v32  ;;  %1542 = vmatpush1.bf16.msra.mxu0 %v2413_v58  ;;  %v852_v32 = vrot.slane %v835_v63, %v851_v28  ;;  %v2452_v58 = vld [vmem:[#allocation9 + $0x1c4] ss:$8 sps:$4 sm:$0xff]   ;;  %v2453_v63 = vld [vmem:[#allocation9 + $0x1d0] ss:$8 sps:$4 sm:$0xff]  }
 0x1d7   : > { %1554 = vmatprep.subr.bf16.mxu0 %v2416_v59  ;;  %v2450_v59 = vld [vmem:[#allocation9 + $0x1c0] ss:$8 sps:$4 sm:$0xff]   ;;  %v2469_v28 = vld [vmem:[#allocation11 + $0x18] sm:$0xff]  }
 0x1d9   : > { %1069 = vmatpush1.bf16.msra.mxu1 %v2354_v35  ;;  %v2437_v35 = vld [vmem:[#allocation9 + $0x174] ss:$8 sps:$4 sm:$0xff]  }
 0x1da   : > { %1070 = vmatprep.subr.bf16.mxu1 %v2359_v36 }
 0x1dd   : > { %1071 = vmatpush1.bf16.msra.mxu1 %v2357_v39 }
 0x1de   : > { %1072 = vmatprep.subr.bf16.mxu1 %v2362_v40 }
 0x1e1   : > { %1073 = vmatpush1.bf16.msra.mxu1 %v2360_v43  ;;  %v2435_v43 = vld [vmem:[#allocation9 + $0x170] ss:$8 sps:$4 sm:$0xff]  }
 0x1e2   : > { %1074 = vmatprep.subr.bf16.mxu1 %v2365_v44 }
 0x1e5   : > { %1075 = vmatpush1.bf16.msra.mxu1 %v2363_v47 }
 0x1e8   : > { %1093 = vmatmul.mubr.bf16.vlgmr.msra.gmra.mrb[4].mxu1 %v3085_v17  ;;  %v2414_v17 = vld [vmem:[#allocation9 + $0x100] ss:$8 sps:$4 sm:$0xff]  }
 0x29b   : > { %v1051_v3 = vpop.f32.mrb[0].mxu1 }
 0x29c   : > { %v1052_v4 = vadd.f32 %v1051_v3, %v840_v1  ;;  %v1053_v5 = vpop.f32.mrb[1].mxu1  ;;  %v2461_v3 = vld [vmem:[#allocation9 + $0x1f4] ss:$8 sps:$4 sm:$0xff]  }
 0x29d   : > { %v1054_v6 = vadd.f32 %v1053_v5, %v844_v2  ;;  %v1055_v7 = vpop.f32.mrb[2].mxu1  ;;  %v2462_v5 = vld [vmem:[#allocation11 + $0x40] sm:$0xff]  }
 0x29e   : > { %v1056_v8 = vadd.f32 %v1055_v7, %v840_v1  ;;  %v1057_v9 = vpop.f32.mrb[3].mxu1  ;;  %v1103_v11 = vmax.f32 %v1052_v4, 0.0  ;;  %v2458_v1 = vld [vmem:[#allocation9 + $0x1e4] ss:$8 sps:$4 sm:$0xff]   ;;  %v2459_v4 = vld [vmem:[#allocation9 + $0x1f0] ss:$8 sps:$4 sm:$0xff]   ;;  %2141 = vmatprep.subr.bf16.mxu1 %v2462_v5 }
 0x29f   : > { %v1058_v10 = vadd.f32 %v1057_v9, %v844_v2  ;;  %v1104_v13 = vmax.f32 %v1054_v6, 0.0  ;;  %v2456_v2 = vld [vmem:[#allocation9 + $0x1e0] ss:$8 sps:$4 sm:$0xff]   ;;  %v2466_v9 = vld [vmem:[#allocation11 + $0x50] sm:$0xff]  }
 0x2a0   : > { %v1107_v12 = vmax.f32 %v1056_v8, 0.0  ;;  %v2463_v6 = vld [vmem:[#allocation11] sm:$0xff]   ;;  %v2464_v7 = vld [vmem:[#allocation11 + $0x48] sm:$0xff]  }
 0x2a1   : > { %v1108_v14 = vmax.f32 %v1058_v10, 0.0  ;;  %2142 = vmatpush3.bf16.msra.mxu1 %v2463_v6  ;;  %v2465_v8 = vld [vmem:[#allocation11 + $0x8] sm:$0xff]   ;;  %v2467_v10 = vld [vmem:[#allocation11 + $0x10] sm:$0xff]  }
 0x2a2   : > { %v1111_v15 = vpack.c.bf16 %v1107_v12, %v1103_v11  ;;  %2143 = vmatprep.subr.bf16.mxu1 %v2464_v7  ;;  %v1179_v11 = vld [vmem:[%s3158_s5] sm:$0x3] }
 0x2a3   : > { %v1112_v16 = vpack.c.bf16 %v1108_v14, %v1104_v13  ;;  %v1184_v12 = vrot.slane %v1179_v11, %v839_v62  ;;  %v1188_v13 = vrot.slane %v1179_v11, %v843_v0  ;;  %v2468_v62 = vld [vmem:[#allocation11 + $0x58] sm:$0xff]   ;;  %v2471_v0 = vld [vmem:[#allocation11 + $0x20] sm:$0xff]  }
 0x2a5   : > { %1543 = vmatprep.mubr.bf16.mxu0 %v1112_v16  ;;  %2144 = vmatpush3.bf16.msra.mxu1 %v2465_v8 }
 0x2a6   : > { %1544 = vmatmul.mubr.bf16.vlgmr.msra.gmra.mrb[0].mxu0 %v1111_v15  ;;  %2145 = vmatprep.subr.bf16.mxu1 %v2466_v9 }
 0x2a7   : > { %1555 = vmatpush1.bf16.msra.mxu0 %v2414_v17 }
 0x2a8   : > { %1556 = vmatprep.subr.bf16.mxu0 %v2419_v18 }
 0x2a9   : > { %2146 = vmatpush3.bf16.msra.mxu1 %v2467_v10 }
 0x2aa   : > { %2147 = vmatprep.subr.bf16.mxu1 %v2468_v62 }
 0x2ab   : > { %1557 = vmatpush1.bf16.msra.mxu0 %v2417_v19 }
 0x2ac   : > { %1558 = vmatprep.subr.bf16.mxu0 %v2422_v20 }
 0x2ad   : > { %2148 = vmatpush3.bf16.msra.mxu1 %v2469_v28 }
 0x2ae   : > { %2149 = vmatprep.subr.bf16.mxu1 %v2470_v61 }
 0x2af   : > { %1559 = vmatpush1.bf16.msra.mxu0 %v2420_v21 }
 0x2b0   : > { %1560 = vmatprep.subr.bf16.mxu0 %v2425_v22 }
 0x2b1   : > { %2150 = vmatpush3.bf16.msra.mxu1 %v2471_v0 }
 0x2b3   : > { %1561 = vmatpush1.bf16.msra.mxu0 %v2423_v23 }
 0x2b4   : > { %1562 = vmatprep.subr.bf16.mxu0 %v2428_v24 }
 0x2b7   : > { %1563 = vmatpush1.bf16.msra.mxu0 %v2426_v25 }
 0x2b8   : > { %1564 = vmatprep.subr.bf16.mxu0 %v2431_v26 }
 0x2bb   : > { %1565 = vmatpush1.bf16.msra.mxu0 %v2429_v29  ;;  %v1094_v34 = vpop.f32.mrb[4].mxu1  ;;  %v2472_v29 = vld [vmem:[#allocation11 + $0x68] sm:$0xff]  }
 0x2bc   : > { %1566 = vmatprep.subr.bf16.mxu0 %v2434_v30  ;;  %v1095_v36 = vadd.f32 %v1094_v34, %v848_v31  ;;  %v1096_v37 = vpop.f32.mrb[5].mxu1  ;;  %v2473_v30 = vld [vmem:[#allocation11 + $0x28] sm:$0xff]   ;;  %2151 = vmatprep.subr.bf16.mxu1 %v2472_v29  ;;  %v2477_v34 = vld [vmem:[#allocation11 + $0x38] sm:$0xff]  }
 0x2bd   : > { %v1097_v38 = vadd.f32 %v1096_v37, %v852_v32  ;;  %v1098_v39 = vpop.f32.mrb[6].mxu1  ;;  %2152 = vmatpush3.bf16.msra.mxu1 %v2473_v30 }
 0x2be   : > { %v1105_v40 = vmax.f32 %v1095_v36, 0.0  ;;  %v1099_v41 = vadd.f32 %v1098_v39, %v848_v31  ;;  %v1100_v42 = vpop.f32.mrb[7].mxu1  ;;  %v2474_v31 = vld [vmem:[#allocation11 + $0x70] sm:$0xff]  }
 0x2bf   : > { %1567 = vmatpush1.bf16.msra.mxu0 %v2432_v33  ;;  %v1106_v44 = vmax.f32 %v1097_v38, 0.0  ;;  %v1101_v45 = vadd.f32 %v1100_v42, %v852_v32  ;;  %v2475_v32 = vld [vmem:[#allocation11 + $0x30] sm:$0xff]   ;;  %2153 = vmatprep.subr.bf16.mxu1 %v2474_v31  ;;  %v2476_v33 = vld [vmem:[#allocation11 + $0x78] sm:$0xff]  }
 0x2c0   : > { %1568 = vmatprep.subr.bf16.mxu0 %v2437_v35  ;;  %v1109_v47 = vmax.f32 %v1099_v41, 0.0 }
 0x2c1   : > { %v1110_v48 = vmax.f32 %v1101_v45, 0.0  ;;  %2154 = vmatpush3.bf16.msra.mxu1 %v2475_v32 }
 0x2c2   : > { %v1113_v49 = vpack.c.bf16 %v1109_v47, %v1105_v40  ;;  %2155 = vmatprep.subr.bf16.mxu1 %v2476_v33 }
 0x2c3   : > { %1569 = vmatpush1.bf16.msra.mxu0 %v2435_v43  ;;  %v1114_v51 = vpack.c.bf16 %v1110_v48, %v1106_v44  ;;  %v2074_v48 = vld [vmem:[%s3198_s0] ss:$0 sm:$0xff] }
 0x2c4   : > { %1570 = vmatprep.subr.bf16.mxu0 %v2440_v46 }
 0x2c5   : > { %1586 = vmatprep.mubr.bf16.mxu0 %v1114_v51  ;;  %2156 = vmatpush3.bf16.msra.mxu1 %v2477_v34 }
 0x2c7   : > { %1571 = vmatpush1.bf16.msra.mxu0 %v2438_v50 }
 0x2c8   : > { %1572 = vmatprep.subr.bf16.mxu0 %v2443_v52 }
 0x2cb   : > { %1573 = vmatpush1.bf16.msra.mxu0 %v2441_v53 }
 0x2cc   : > { %1574 = vmatprep.subr.bf16.mxu0 %v2446_v54 }
 0x2cf   : > { %1575 = vmatpush1.bf16.msra.mxu0 %v2444_v55 }
 0x2d0   : > { %1576 = vmatprep.subr.bf16.mxu0 %v2449_v56 }
 0x2d3   : > { %1577 = vmatpush1.bf16.msra.mxu0 %v2447_v57 }
 0x2d4   : > { %1578 = vmatprep.subr.bf16.mxu0 %v2452_v58 }
 0x2d7   : > { %1579 = vmatpush1.bf16.msra.mxu0 %v2450_v59 }
 0x2d8   : > { %1580 = vmatprep.subr.bf16.mxu0 %v2455_v60 }
 0x2db   : > { %1581 = vmatpush1.bf16.msra.mxu0 %v2453_v63 }
 0x2dc   : > { %1582 = vmatprep.subr.bf16.mxu0 %v2458_v1 }
 0x2df   : > { %1583 = vmatpush1.bf16.msra.mxu0 %v2456_v2 }
 0x2e0   : > { %1584 = vmatprep.subr.bf16.mxu0 %v2461_v3 }
 0x2e3   : > { %1585 = vmatpush1.bf16.msra.mxu0 %v2459_v4 }
 0x2e6   : > { %1587 = vmatmul.mubr.bf16.vlgmr.msra.gmra.mrb[0].mxu0 %v1113_v49 }
 0x3b9   : > { %v1588_v14 = vpop.f32.mrb[0].mxu0 }
 0x3ba   : > { %v2163_v15 = vadd.f32 %v1588_v14, %v1184_v12  ;;  %v1590_v16 = vpop.f32.mrb[1].mxu0 }
 0x3bb   : > { %v2164_v17 = vadd.f32 %v1590_v16, %v1188_v13  ;;  %v1592_v18 = vpop.f32.mrb[2].mxu0 }
 0x3bc   : > { %v2165_v19 = vadd.f32 %v1592_v18, %v1184_v12  ;;  %v1594_v20 = vpop.f32.mrb[3].mxu0  ;;  %v1597_v21 = vmul.f32 %v2163_v15, %v2163_v15 }
 0x3bd   : > { %v2166_v22 = vadd.f32 %v1594_v20, %v1188_v13  ;;  %v1598_v23 = vmul.f32 %v2164_v17, %v2164_v17 }
 0x3be   : > { %v1599_v24 = vmul.f32 %v2165_v19, %v2165_v19 }
 0x3bf   : > { %v1600_v25 = vmul.f32 %v2166_v22, %v2166_v22  ;;  %v1601_v26 = vadd.f32 %v1598_v23, %v1597_v21 }
 0x3c1   : > { %1602 = vadd.xlane.f32.xlu0 %v1601_v26  ;;  %v1604_v27 = vadd.f32 %v1600_v25, %v1599_v24 }
 0x3c5   : > { %1605 = vadd.xlane.f32.xlu0 %v1604_v27 }
 0x44e   : > { %v1603_v35 = vpop.xlane.xlu0 %1602 }
 0x44f   : > { %v1607_v36 = vmax.f32 %v1603_v35, 1e-24 }
 0x451   : > { %2478 = vrsqrt.f32 %v1607_v36 }
 0x452   : > { %v1606_v37 = vpop.xlane.xlu0 %1605 }
 0x453   : > { %v1608_v38 = vmax.f32 %v1606_v37, 1e-24 }
 0x455   : > { %2480 = vrsqrt.f32 %v1608_v38 }
 0x45b   : > { %v2479_v39 = vpop.eup %2478 }
 0x45c   : > { %v1612_v41 = vmul.f32 %v2479_v39, %v2164_v17  ;;  %v1611_v43 = vmul.f32 %v2479_v39, %v2163_v15 }
 0x45f   : > { %v2481_v40 = vpop.eup %2480 }
 0x460   : > { %v1614_v42 = vmul.f32 %v2481_v40, %v2166_v22  ;;  %v1613_v44 = vmul.f32 %v2481_v40, %v2165_v19 }
 0x462   : > { %v1616_v45 = vpack.c.bf16 %v1614_v42, %v1612_v41  ;;  %v1615_v46 = vpack.c.bf16 %v1613_v44, %v1611_v43 }
 0x464   : > { %1784 = vmatprep.mubr.bf16.mxu1 %v1616_v45 }
 0x465   : > { %1785 = vmatmul.mubr.bf16.vlgmr.msra.gmra.mrb[8].mxu1 %v1615_v46 }
 0x538   : > { %v2157_v47 = vpop.f32.mrb[8].mxu1 }
 0x539   : > { %v2158_v49 = vpop.f32.mrb[9].mxu1 }
 0x53a   : > { %v2159_v50 = vadd.f32 %v2158_v49, %v2157_v47  ;;  %v2160_v51 = vpop.f32.mrb[10].mxu1 }
 0x53b   : > { %v2161_v52 = vpop.f32.mrb[11].mxu1 }
 0x53c   : > { %v1787_v53 = vadd.f32 %v2159_v50, %v2074_v48  ;;  %v2162_v54 = vadd.f32 %v2161_v52, %v2160_v51 }
 0x53e   : > { %1793 = vst [vmem:[#allocation12] sm:$0xff] %v1787_v53  ;;  %v1790_v55 = vadd.f32 %v2162_v54, %v2074_v48 }
 0x540   : > { %1794 = vst [vmem:[#allocation12 + $0x8] sm:$0xff] %v1790_v55 }
 0x541 PF: > { %p2215_p9 = scmp.eq.s32.totalorder %s2811_s11, 1  ;;  %s2734_s24 = smov [#allocation12]  }
 0x542   : > { %s1804_s15 = sshll.u32 %s2734_s24, 4  ;;  %s1805_s15 = int_to_ptr.vmem [resolvable:$true] %s1804_s15 }
 0x543   : > { %s2626_s25 = scalar_lea.vmem %s1805_s15, 256  ;;  %p2633_p1 = scmp.lt.s32.totalorder %s1805_s15, %s1805_s15 }
 0x544   : > { %p2627_p10 = scmp.ne.s32.totalorder %s1805_s15, %s2626_s25  ;;  %p2634_p3 = scmp.lt.s32.totalorder %s2626_s25, %s2626_s25 }
 0x546   : > { %p2628_p11 = pnand %p2627_p10, %p2215_p9  ;;  %p2635_p2 = por %p2634_p3, %p2633_p1 }
 0x548   : > { %p2629_p5 = pneg %p2628_p11 }
 0x54a   : > { %p2636_p13 = pnand %p2635_p2, %p2629_p5 }
 0x54c   : > { %2639 = shalt.err (!%p2636_p13)
}
 0x54d   : > { %s3199_s27 = sld [smem:[#allocation22_spill]] }
 0x553   : > { %s3200_s16 = smov %s3199_s27  ;;  %s2640_s21 = scalar_lea.hbm %s3199_s27, 256 }
 0x554   : > { %p2641_p0 = scmp.ne.s32.totalorder %s3200_s16, %s2640_s21  ;;  %p2646_p12 = scmp.lt.u32.totalorder %s2640_s21, %s3200_s16 }
 0x556   : > { %p2642_p6 = pnand %p2641_p0, %p2215_p9 }
 0x558   : > { %p2643_p8 = pneg %p2642_p6 }
 0x55a   : > { %p2648_p4 = pnand %p2646_p12, %p2643_p8 }
 0x55c   : > { %2651 = shalt.err (!%p2648_p4)
}
 0x55d   : > { %s2735_s20 = smov 128   ;;  %s2736_s30 = smov 8  }
 0x55e   : > { %2188 = dma.vmem_to_hbm [thread:$0]  (%p2215_p9), %s1805_s15, 256, %s3200_s16, [#allocation5], %s2735_s20, %s2735_s20, %s2736_s30  }
 0x55f   : > { %2693 = dma.done.wait (%p2215_p9), [#allocation5], 256  }
 0x560   : > { %2695 = vsyncadd (%p2215_p9), [#allocation5], 4294967040 }
 0x561 PF: > { %s26_s10 = sadd.s32 1, %s2718_s10   ;;  %s3201_s27 = smov %s2702_s28 }
 0x562   : > { %p23_p7 = scmp.ge.s32.totalorder %s26_s10, 4   ;;  %s3202_s28 = smov %s2706_s29 }
 0x563   : > { %s3203_s29 = smov %s2981_s8  ;;  %s3204_s30 = smov %s2714_s9 }
 0x564   : > { %s3205_s9 = smov %s3207_s7  ;;  %25 = sbr.rel (!%p23_p7) target bundleno = 14 (0xe), region = 123 }
 0x56b   :  { %1820 = vsyncpa [#allocation4], 1 }
 0x56c   :  { %1822 = vsyncpa [#allocation4 + $0x1], 1 }
 0x56d   :  { %1823 = vsyncpa [#allocation7], 1 }
 0x56e   :  { %1825 = vsyncpa [#allocation7 + $0x1], 1 }
 0x56f   :  { %1826 = vsyncpa [#allocation10], 1 }
 0x570   :  { %1827 = vsyncpa [#allocation5], 1 }
 0x571   :  { %1829 = vsyncpa [#allocation5 + $0x1], 1 }

// kernel: tpu_custom_call.1
= control target key start
LH: loop header
LB: loop body
LE: loop exit
PB: predicated region body
PF: predicated region fallthrough
CT: control target
= control target key end

     0   :  { %s3153_s0 = inlined_call_operand.hbm [shape: bf16[16,1024], index: 0, kind: input, shape index: {}]   ;;  %s3154_s1 = inlined_call_operand.hbm [shape: bf16[1024,128], index: 1, kind: input, shape index: {}]   ;;  %s3155_s2 = inlined_call_operand.hbm [shape: bf16[128,512], index: 2, kind: input, shape index: {}]   ;;  %s3156_s3 = inlined_call_operand.vmem [shape: f32[1,512], index: 3, kind: input, shape index: {}]   ;;  %s3157_s4 = inlined_call_operand.hbm [shape: bf16[512,256], index: 4, kind: input, shape index: {}]   ;;  %s3158_s5 = inlined_call_operand.vmem [shape: f32[1,256], index: 5, kind: input, shape index: {}]   ;;  %s3159_s6 = inlined_call_operand.hbm [shape: bf16[256,128], index: 6, kind: input, shape index: {}]   ;;  %s3160_s7 = inlined_call_operand.vmem [shape: f32[1,128], index: 7, kind: input, shape index: {}]   ;;  %s3161_s8 = inlined_call_operand.hbm [shape: f32[16,128], index: 8, kind: output, shape index: {}]  }
   0x1   :  { %3171 = sst [smem:[#allocation18_spill]] %s3153_s0 }
   0x2   :  { %3172 = sst [smem:[#allocation19_spill]] %s3155_s2 }
   0x3   :  { %3173 = sst [smem:[#allocation20_spill]] %s3157_s4 }
   0x4   :  { %3174 = sst [smem:[#allocation21_spill]] %s3160_s7 }
   0x5   :  { %3175 = sst [smem:[#allocation22_spill]] %s3161_s8 }
   0x6   :  { %13 = vsyncpa [#allocation4], 0 }
   0x7   :  { %15 = vsyncpa [#allocation4 + $0x1], 0 }
   0x8   :  { %16 = vsyncpa [#allocation7], 0 }
   0x9   :  { %18 = vsyncpa [#allocation7 + $0x1], 0 }
   0xa   :  { %19 = vsyncpa [#allocation10], 0 }
   0xb   :  { %20 = vsyncpa [#allocation5], 0  ;;  %s2782_s27 = smov 0   ;;  %s2784_s28 = smov 0  }
   0xc   :  { %s2786_s29 = smov 0   ;;  %s2788_s30 = smov 0  }
   0xd   :  { %s2790_s9 = smov 0   ;;  %s2792_s10 = smov 0  }
   0xe LB: > { %s2811_s11 = sadd.s32 4294967295, %s2718_s10   ;;  %p54_p0 = scmp.ne.s32.totalorder %s2706_s29, %s2702_s28  ;;  %s2718_s10 = sphi %s2792_s10, %s26_s10   ;;  %s2714_s9 = sphi %s2790_s9, %s3205_s9   ;;  %s2710_s30 = sphi %s2788_s30, %s3204_s30   ;;  %s2706_s29 = sphi %s2786_s29, %s3203_s29   ;;  %s2702_s28 = sphi %s2784_s28, %s3202_s28   ;;  %s2698_s27 = sphi %s2782_s27, %s3201_s27  }
   0xf   : > { %p55_p1 = scmp.eq.s32.totalorder %s2718_s10, 0  ;;  %p60_p2 = scmp.ne.s32.totalorder %s2702_s28, %s2698_s27 }
  0x10   : > { %p3162_p3 = scmp.eq.s32.totalorder %s2811_s11, 0  ;;  %p1923_p5 = scmp.ge.s32.totalorder %s2718_s10, 1 }
  0x11   : > { %p56_p4 = por %p55_p1, %p54_p0  ;;  %p249_p7 = scmp.lt.s32.totalorder %s2718_s10, 3 }
  0x12   : > { %p2822_p6 = por %p3162_p3, %p60_p2  ;;  %s2720_s15 = smov [#allocation8]  }
  0x13   : > { %p2827_p8 = pnand %p1923_p5, %p249_p7  ;;  %s261_s16 = sshll.u32 %s2720_s15, 4  ;;  %s2831_s16 = int_to_ptr.vmem [resolvable:$true] %s261_s16 }
  0x14   : > { %s3176_s13 = scalar_select %p2822_p6, 1, 0 }
  0x15   : > { %s3177_s14 = scalar_select %p2827_p8, 1, 0 }
  0x16   : > { %p2191_p9 = pneg %p2827_p8  ;;  %p2211_p10 = scmp.lt.s32.totalorder %s2718_s10, 2 }
  0x17   : > { %s2721_s19 = smov [#allocation9]   ;;  %s3180_s2 = sld [smem:[#allocation19_spill]] }
  0x18   : > { %p2838_p11 = pnand %p2191_p9, %p3162_p3  ;;  %p2842_p12 = pnand %p2211_p10, %p56_p4 }
  0x19   : > { %s277_s20 = sshll.u32 %s2721_s19, 4  ;;  %s2846_s20 = int_to_ptr.vmem [resolvable:$true] %s277_s20 }
  0x1a   : > { %s3179_s18 = scalar_select %p2842_p12, 1, 0 }
  0x1b   : > { %p2856_p0 = pneg %p2838_p11 }
  0x1d   : > { %s2482_s23 = scalar_lea.hbm %s3180_s2, 4096 }
  0x1e   : > { %p2483_p13 = scmp.ne.s32.totalorder %s3180_s2, %s2482_s23  ;;  %p2489_p4 = scmp.lt.u32.totalorder %s2482_s23, %s3180_s2 }
  0x20   : > { %p2485_p1 = pnand %p2856_p0, %p2483_p13 }
  0x22   : > { %p2486_p2 = pneg %p2485_p1 }
  0x24   : > { %p2491_p5 = pnand %p2489_p4, %p2486_p2 }
  0x26   : > { %2494 = shalt.err (!%p2491_p5)
}
  0x27   : > { %s2495_s19 = scalar_lea.vmem %s2831_s16, 4096  ;;  %p2503_p3 = scmp.lt.s32.totalorder %s2831_s16, %s2831_s16 }
  0x28   : > { %p2496_p7 = scmp.ne.s32.totalorder %s2831_s16, %s2495_s19  ;;  %p2504_p6 = scmp.lt.s32.totalorder %s2495_s19, %s2495_s19 }
  0x2a   : > { %p2498_p9 = pnand %p2496_p7, %p2856_p0  ;;  %p2505_p13 = por %p2504_p6, %p2503_p3 }
  0x2c   : > { %p2499_p10 = pneg %p2498_p9 }
  0x2e   : > { %p2506_p1 = pnand %p2505_p13, %p2499_p10 }
  0x30   : > { %2509 = shalt.err (!%p2506_p1)
}
  0x31   : > { %s3165_s21 = smov 256   ;;  %s3166_s22 = smov 16  }
  0x32   : > { %2194 = dma.hbm_to_vmem [thread:$0]  (!%p2838_p11), %s3180_s2, 4096, %s2831_s16, [#allocation7], %s3165_s21, %s3165_s21, %s3166_s22  }
  0x33   : > { %s3182_s4 = sld [smem:[#allocation20_spill]] }
  0x39   : > { %s2510_s15 = scalar_lea.hbm %s3182_s4, 8192 }
  0x3a   : > { %p2511_p3 = scmp.ne.s32.totalorder %s3182_s4, %s2510_s15  ;;  %p2517_p4 = scmp.lt.u32.totalorder %s2510_s15, %s3182_s4 }
  0x3c   : > { %p2513_p6 = pnand %p2511_p3, %p2856_p0 }
  0x3e   : > { %p2514_p2 = pneg %p2513_p6 }
  0x40   : > { %p2519_p5 = pnand %p2517_p4, %p2514_p2 }
  0x42   : > { %2522 = shalt.err (!%p2519_p5)
}
  0x43   : > { %s2523_s16 = scalar_lea.vmem %s2846_s20, 8192  ;;  %p2531_p13 = scmp.lt.s32.totalorder %s2846_s20, %s2846_s20 }
  0x44   : > { %p2524_p7 = scmp.ne.s32.totalorder %s2846_s20, %s2523_s16  ;;  %p2532_p1 = scmp.lt.s32.totalorder %s2523_s16, %s2523_s16 }
  0x46   : > { %p2526_p9 = pnand %p2524_p7, %p2856_p0  ;;  %p2533_p3 = por %p2532_p1, %p2531_p13 }
  0x48   : > { %p2527_p10 = pneg %p2526_p9 }
  0x4a   : > { %p2534_p6 = pnand %p2533_p3, %p2527_p10 }
  0x4c   : > { %2537 = shalt.err (!%p2534_p6)
}
  0x4d   : > { %s2724_s12 = smov 128   ;;  %s2725_s7 = smov 8  }
  0x4e   : > { %2197 = dma.hbm_to_vmem [thread:$0]  (!%p2838_p11), %s3182_s4, 8192, %s2846_s20, [#allocation10], %s2724_s12, %s2724_s12, %s2725_s7  }
  0x4f   : > { %s2726_s24 = smov [#allocation11]   ;;  %s2538_s19 = scalar_lea.hbm %s3159_s6, 2048 }
  0x50   : > { %s293_s25 = sshll.u32 %s2726_s24, 4  ;;  %p2539_p2 = scmp.ne.s32.totalorder %s3159_s6, %s2538_s19  ;;  %s294_s25 = int_to_ptr.vmem [resolvable:$true] %s293_s25 }
  0x51   : > { %p2545_p7 = scmp.lt.u32.totalorder %s2538_s19, %s3159_s6 }
  0x52   : > { %p2541_p4 = pnand %p2539_p2, %p2856_p0 }
  0x54   : > { %p2542_p5 = pneg %p2541_p4 }
  0x56   : > { %p2547_p9 = pnand %p2545_p7, %p2542_p5 }
  0x58   : > { %2550 = shalt.err (!%p2547_p9)
}
  0x59   : > { %s2551_s20 = scalar_lea.vmem %s294_s25, 2048  ;;  %p2559_p3 = scmp.lt.s32.totalorder %s294_s25, %s294_s25 }
  0x5a   : > { %p2552_p10 = scmp.ne.s32.totalorder %s294_s25, %s2551_s20  ;;  %p2560_p6 = scmp.lt.s32.totalorder %s2551_s20, %s2551_s20 }
  0x5c   : > { %p2554_p13 = pnand %p2552_p10, %p2856_p0  ;;  %p2561_p8 = por %p2560_p6, %p2559_p3 }
  0x5e   : > { %p2555_p1 = pneg %p2554_p13 }
  0x60   : > { %p2562_p12 = pnand %p2561_p8, %p2555_p1 }
  0x62   : > { %2565 = shalt.err (!%p2562_p12)
}
  0x63   : > { %s3169_s21 = smov 64   ;;  %s3170_s2 = smov 4  }
  0x64   : > { %2200 = dma.hbm_to_vmem [thread:$0]  (!%p2838_p11), %s3159_s6, 2048, %s294_s25, [#allocation10], %s3169_s21, %s3169_s21, %s3170_s2  }
  0x65   : > { %s2925_s12 = sand.u32 1, %s2706_s29   ;;  %s35_s7 = sadd.s32 1, %s2714_s9 }
  0x66   : > { %s1928_s8 = sshll.u32 %s2925_s12, 5  ;;  %p36_p8 = scmp.ge.s32.totalorder %s35_s7, 2 }
  0x67   : > { %s2095_s23 = sshll.u32 %s2714_s9, 8  ;;  %s314_s24 = scalar_lea.vmem [#allocation3], %s1928_s8 }
  0x68   : > { %s324_s27 = sshll.u32 %s314_s24, 4  ;;  %s3207_s7 = smov (%p36_p8, %s35_s7), 0  ;;  %s2937_s27 = int_to_ptr.vmem [resolvable:$true] %s324_s27 }
  0x69   : > { %s3183_s0 = sld [smem:[#allocation18_spill]]  ;;  %s43_s25 = ssub.s32 %s2714_s9, %s3207_s7 }
  0x6a   : > { %p2941_p11 = scmp.eq.s32.totalorder %s43_s25, 0  ;;  %s311_s26 = scalar_lea.sflag [#allocation4], %s2925_s12 }
  0x6b   : > { %p3185_p0 = scmp.ne.s32.totalorder %s3179_s18, 0 }
  0x6d   : > { %p2568_p2 = pneg %p3185_p0 }
  0x6f   : > { %s2935_s19 = scalar_lea.hbm %s3183_s0, %s2095_s23  ;;  %s2571_s24 = scalar_lea.hbm %s3183_s0, 1024 }
  0x70   : > { %s2566_s22 = scalar_lea.hbm %s2935_s19, 512  ;;  %p2572_p7 = scmp.lt.u32.totalorder %s2935_s19, %s3183_s0 }
  0x71   : > { %p2567_p12 = scmp.ne.s32.totalorder %s2935_s19, %s2566_s22  ;;  %p2573_p9 = scmp.lt.u32.totalorder %s2571_s24, %s2566_s22 }
  0x72   : > { %p2575_p13 = scmp.lt.u32.totalorder %s2566_s22, %s2935_s19 }
  0x73   : > { %p2569_p4 = pnand %p2568_p2, %p2567_p12  ;;  %p2574_p10 = por %p2573_p9, %p2572_p7 }
  0x75   : > { %p2570_p5 = pneg %p2569_p4  ;;  %p2576_p1 = por %p2575_p13, %p2574_p10 }
  0x77   : > { %p2577_p3 = pnand %p2576_p1, %p2570_p5 }
  0x79   : > { %2580 = shalt.err (!%p2577_p3)
}
  0x7a   : > { %s2581_s25 = scalar_lea.vmem %s2937_s27, 512  ;;  %s2729_s8 = smov [#allocation3]  }
  0x7b   : > { %p2582_p6 = scmp.ne.s32.totalorder %s2937_s27, %s2581_s25  ;;  %s2586_s23 = sshll.u32 %s2729_s8, 4  ;;  %s2587_s23 = int_to_ptr.vmem [resolvable:$false] %s2586_s23 }
  0x7c   : > { %s2588_s17 = scalar_lea.vmem %s2587_s23, 1024  ;;  %p2589_p4 = scmp.lt.s32.totalorder %s2937_s27, %s2587_s23 }
  0x7d   : > { %p2584_p8 = pnand %p2582_p6, %p2568_p2  ;;  %p2590_p7 = scmp.lt.s32.totalorder %s2588_s17, %s2581_s25 }
  0x7f   : > { %p2585_p12 = pneg %p2584_p8  ;;  %p2591_p9 = por %p2590_p7, %p2589_p4 }
  0x81   : > { %p2592_p10 = pnand %p2591_p9, %p2585_p12 }
  0x83   : > { %2595 = shalt.err (!%p2592_p10)
}
  0x84   : > { %s2730_s22 = smov 512   ;;  %s3186_s24 = smov 16  }
  0x85   : > { %s3187_s15 = smov 256   ;;  %s3188_s25 = sadd.s32 1, %s2706_s29 }
  0x86   : > { %2204 = dma.hbm_to_vmem [thread:$0]  (!%p3185_p0), %s2935_s19, 512, %s2937_s27, %s311_s26, %s2730_s22, %s3187_s15, %s3186_s24  }
  0x87   : > { %s2981_s8 = scalar_select %p2941_p11, %s2706_s29, %s3188_s25  }
  0x88   : > { %s1931_s23 = sshll.u32 %s2925_s12, 8  ;;  %s2096_s17 = sshll.u32 %s2714_s9, 12 }
  0x89   : > { %s2988_s20 = scalar_lea.hbm %s3154_s1, %s2096_s17  ;;  %s338_s0 = scalar_lea.vmem [#allocation6], %s1931_s23 }
  0x8a   : > { %s345_s4 = sshll.u32 %s338_s0, 4  ;;  %s3189_s27 = sand.u32 1, %s2718_s10   ;;  %s2990_s4 = int_to_ptr.vmem [resolvable:$true] %s345_s4 }
  0x8b   : > { %s2994_s19 = scalar_lea.sflag [#allocation7], %s3189_s27  ;;  %s2596_s16 = scalar_lea.hbm %s2988_s20, 4096 }
  0x8c   : > { %p2597_p11 = scmp.ne.s32.totalorder %s2988_s20, %s2596_s16  ;;  %s2601_s12 = scalar_lea.hbm %s3154_s1, 8192 }
  0x8d   : > { %p2602_p1 = scmp.lt.u32.totalorder %s2988_s20, %s3154_s1  ;;  %p2603_p3 = scmp.lt.u32.totalorder %s2601_s12, %s2596_s16 }
  0x8e   : > { %p2599_p5 = pnand %p2597_p11, %p2568_p2  ;;  %p2605_p8 = scmp.lt.u32.totalorder %s2596_s16, %s2988_s20 }
  0x8f   : > { %p2604_p6 = por %p2603_p3, %p2602_p1 }
  0x90   : > { %p2600_p13 = pneg %p2599_p5 }
  0x91   : > { %p2606_p12 = por %p2605_p8, %p2604_p6 }
  0x93   : > { %p2607_p4 = pnand %p2606_p12, %p2600_p13 }
  0x95   : > { %2610 = shalt.err (!%p2607_p4)
}
  0x96   : > { %s2611_s0 = scalar_lea.vmem %s2990_s4, 4096  ;;  %s2731_s24 = smov [#allocation6]  }
  0x97   : > { %p2612_p7 = scmp.ne.s32.totalorder %s2990_s4, %s2611_s0  ;;  %s2616_s15 = sshll.u32 %s2731_s24, 4  ;;  %s2617_s15 = int_to_ptr.vmem [resolvable:$false] %s2616_s15 }
  0x98   : > { %s2618_s25 = scalar_lea.vmem %s2617_s15, 8192  ;;  %p2619_p11 = scmp.lt.s32.totalorder %s2990_s4, %s2617_s15 }
  0x99   : > { %p2614_p9 = pnand %p2612_p7, %p2568_p2  ;;  %p2620_p5 = scmp.lt.s32.totalorder %s2618_s25, %s2611_s0 }
  0x9b   : > { %p2615_p10 = pneg %p2614_p9  ;;  %p2621_p1 = por %p2620_p5, %p2619_p11 }
  0x9d   : > { %p2622_p3 = pnand %p2621_p1, %p2615_p10 }
  0x9f   : > { %2625 = shalt.err (!%p2622_p3)
}
  0xa0   : > { %s3190_s23 = smov 4   ;;  %s3191_s17 = smov 64  }
  0xa1   : > { %2207 = dma.hbm_to_vmem [thread:$0]  (!%p3185_p0), %s2988_s20, 4096, %s2990_s4, %s2994_s19, %s3191_s17, %s3191_s17, %s3190_s23  }
  0xa2   : > { %p3192_p2 = scmp.ne.s32.totalorder %s3177_s14, 0 }
  0xa3   : > { %s359_s27 = sand.u32 (!%p3192_p2), 1, %s2702_s28   ;;  %p3193_p13 = scmp.ne.s32.totalorder (!%p3192_p2), %s3176_s13, 0 }
  0xa4   : > { %357 = sbr.rel (%p3192_p2) target bundleno = 1377 (0x561), region = 52  ;;  %s1935_s16 = sshll.u32 (!%p3192_p2), %s359_s27, 5 }
  0xa5   : > { %s360_s21 = scalar_lea.sflag (!%p3192_p2), [#allocation4], %s359_s27  ;;  %s3026_s2 = scalar_lea.vmem (!%p3192_p2), [#allocation3], %s1935_s16 }
  0xab   : > { %2677 = dma.done.wait (%p3193_p13), %s360_s21, 512  }
  0xac   : > { %2679 = vsyncadd (%p3193_p13), %s360_s21, 4294966784  ;;  %s368_s18 = sand.u32 1, %s2811_s11   ;;  %s1936_s12 = sshll.u32 %s359_s27, 8 }
  0xad   : > { %s369_s4 = scalar_lea.sflag [#allocation7], %s368_s18  ;;  %s3033_s20 = scalar_lea.vmem [#allocation6], %s1936_s12 }
  0xae   : > { %2681 = dma.done.wait (%p3193_p13), %s369_s4, 4096  }
  0xaf   : > { %2683 = vsyncadd (%p3193_p13), %s369_s4, 4294963200  ;;  %p3194_p0 = scmp.eq.s32.totalorder %s2811_s11, 0 }
  0xb1   : > { %2685 = dma.done.wait (%p3194_p0), [#allocation7], 4096   ;;  %p3195_p6 = pmov %p3194_p0 }
  0xb2   : > { %p3196_p8 = pmov %p3194_p0 }
  0xb3   : > { %2687 = vsyncadd (%p3195_p6), [#allocation7], 4294963200 }
  0xb4   : > { %2689 = dma.done.wait (%p3196_p8), [#allocation10], 10240   ;;  %p3197_p12 = pmov %p3194_p0 }
  0xb5   : > { %p1940_p4 = scmp.ne.s32.totalorder %s2710_s30, 0 }
  0xb6   : > { %2691 = vsyncadd (%p3197_p12), [#allocation10], 4294957056  ;;  %v2732_v0 = vmov (!%p1940_p4), 0.0  }
  0xb7   : > { %425 = sbr.rel (%p1940_p4) target bundleno = 190 (0xbe), region = 76  ;;  %426 = vst [vmem:[#allocation2] sm:$0xff] (!%p1940_p4), %v2732_v0  ;;  %427 = vst [vmem:[#allocation2 + $0x8] sm:$0xff] (!%p1940_p4), %v2732_v0 }
  0xbe PF: > { %v2280_v1 = vld [vmem:[%s3033_s20 + $0x40] sm:$0xff]   ;;  %v2284_v5 = vld [vmem:[%s3033_s20 + $0x48] sm:$0xff]   ;;  %v2288_v9 = vld [vmem:[%s3033_s20 + $0x50] sm:$0xff]   ;;  %p1977_p7 = scmp.ne.s32.totalorder %s2710_s30, 1 }
  0xbf   : > { %v2281_v2 = vld [vmem:[%s3033_s20 + $0xc0] sm:$0xff]   ;;  %2097 = vmatprep.subr.bf16.mxu0 %v2280_v1  ;;  %v2285_v6 = vld [vmem:[%s3033_s20 + $0xc8] sm:$0xff]   ;;  %v2289_v10 = vld [vmem:[%s3033_s20 + $0xd0] sm:$0xff]   ;;  %v2733_v57 = vmov (!%p1977_p7), 0   ;;  %s3198_s0 = sld [smem:[#allocation21_spill]] (!%p1977_p7) }
  0xc0   : > { %v2282_v3 = vld [vmem:[%s3033_s20] sm:$0xff]   ;;  %2119 = vmatprep.subr.bf16.mxu1 %v2281_v2  ;;  %v2286_v7 = vld [vmem:[%s3033_s20 + $0x8] sm:$0xff]   ;;  %v2290_v11 = vld [vmem:[%s3033_s20 + $0x10] sm:$0xff]  }
  0xc1   : > { %v2283_v4 = vld [vmem:[%s3033_s20 + $0x80] sm:$0xff]   ;;  %2098 = vmatpush3.bf16.msra.mxu0 %v2282_v3  ;;  %v2287_v8 = vld [vmem:[%s3033_s20 + $0x88] sm:$0xff]   ;;  %v2291_v12 = vld [vmem:[%s3033_s20 + $0x90] sm:$0xff]  }
  0xc2   : > { %2120 = vmatpush3.bf16.msra.mxu1 %v2283_v4  ;;  %2099 = vmatprep.subr.bf16.mxu0 %v2284_v5  ;;  %v2292_v13 = vld [vmem:[%s3033_s20 + $0x58] sm:$0xff]   ;;  %v2296_v17 = vld [vmem:[%s3033_s20 + $0x60] sm:$0xff]   ;;  %v2300_v21 = vld [vmem:[%s3033_s20 + $0x68] sm:$0xff]  }
  0xc3   : > { %2121 = vmatprep.subr.bf16.mxu1 %v2285_v6  ;;  %v2293_v14 = vld [vmem:[%s3033_s20 + $0xd8] sm:$0xff]   ;;  %v2297_v18 = vld [vmem:[%s3033_s20 + $0xe0] sm:$0xff]   ;;  %v2301_v22 = vld [vmem:[%s3033_s20 + $0xe8] sm:$0xff]  }
  0xc4   : > { %v2294_v15 = vld [vmem:[%s3033_s20 + $0x18] sm:$0xff]   ;;  %v2298_v19 = vld [vmem:[%s3033_s20 + $0x20] sm:$0xff]   ;;  %v2302_v23 = vld [vmem:[%s3033_s20 + $0x28] sm:$0xff]  }
  0xc5   : > { %2100 = vmatpush3.bf16.msra.mxu0 %v2286_v7  ;;  %v2295_v16 = vld [vmem:[%s3033_s20 + $0x98] sm:$0xff]   ;;  %v2299_v20 = vld [vmem:[%s3033_s20 + $0xa0] sm:$0xff]   ;;  %v2303_v24 = vld [vmem:[%s3033_s20 + $0xa8] sm:$0xff]  }
  0xc6   : > { %2122 = vmatpush3.bf16.msra.mxu1 %v2287_v8  ;;  %2101 = vmatprep.subr.bf16.mxu0 %v2288_v9  ;;  %v2304_v25 = vld [vmem:[%s3033_s20 + $0x70] sm:$0xff]   ;;  %v2308_v29 = vld [vmem:[%s3033_s20 + $0x78] sm:$0xff]   ;;  %v2366_v6 = vld [vmem:[#allocation9 + $0x4] ss:$8 sps:$4 sm:$0xff] (!%p1977_p7)  }
  0xc7   : > { %2123 = vmatprep.subr.bf16.mxu1 %v2289_v10  ;;  %v2305_v26 = vld [vmem:[%s3033_s20 + $0xf0] sm:$0xff]   ;;  %v2309_v30 = vld [vmem:[%s3033_s20 + $0xf8] sm:$0xff]   ;;  %v2368_v7 = vld [vmem:[#allocation9] ss:$8 sps:$4 sm:$0xff] (!%p1977_p7)  }
  0xc8   : > { %v2306_v27 = vld [vmem:[%s3033_s20 + $0x30] sm:$0xff]   ;;  %v2310_v31 = vld [vmem:[%s3033_s20 + $0x38] sm:$0xff]  }
  0xc9   : > { %2102 = vmatpush3.bf16.msra.mxu0 %v2290_v11  ;;  %v2307_v28 = vld [vmem:[%s3033_s20 + $0xb0] sm:$0xff]   ;;  %v2311_v32 = vld [vmem:[%s3033_s20 + $0xb8] sm:$0xff]  }
  0xca   : > { %2124 = vmatpush3.bf16.msra.mxu1 %v2291_v12  ;;  %2103 = vmatprep.subr.bf16.mxu0 %v2292_v13  ;;  %v2312_v33 = vld [vmem:[%s3026_s2] ss:$16 sps:$4 sm:$0xff]   ;;  %v2314_v34 = vld [vmem:[%s3026_s2 + $0x4] ss:$16 sps:$4 sm:$0xff]   ;;  %v2315_v35 = vld [vmem:[%s3026_s2 + $0x8] ss:$16 sps:$4 sm:$0xff]  }
  0xcb   : > { %2125 = vmatprep.subr.bf16.mxu1 %v2293_v14  ;;  %v2317_v36 = vld [vmem:[%s3026_s2 + $0xc] ss:$16 sps:$4 sm:$0xff]   ;;  %742 = vmatprep.mubr.bf16.mxu0 %v2314_v34  ;;  %v428_v46 = vld [vmem:[#allocation2] sm:$0xff] }
  0xcc   : > { %783 = vmatprep.mubr.bf16.mxu1 %v2317_v36  ;;  %v429_v51 = vld [vmem:[#allocation2 + $0x8] sm:$0xff]  ;;  %v2318_v55 = vld [vmem:[#allocation8 + $0x4] ss:$16 sps:$4 sm:$0xff] (!%p1977_p7)   ;;  %v2320_v56 = vld [vmem:[#allocation8] ss:$16 sps:$4 sm:$0xff] (!%p1977_p7)  }
  0xcd   : > { %2104 = vmatpush3.bf16.msra.mxu0 %v2294_v15  ;;  %v2321_v58 = vld [vmem:[#allocation8 + $0x24] ss:$16 sps:$4 sm:$0xff] (!%p1977_p7)   ;;  %v2323_v59 = vld [vmem:[#allocation8 + $0x20] ss:$16 sps:$4 sm:$0xff] (!%p1977_p7)   ;;  %v2344_v15 = vld [vmem:[#allocation8 + $0xc] ss:$16 sps:$4 sm:$0xff] (!%p1977_p7)  }
  0xce   : > { %2126 = vmatpush3.bf16.msra.mxu1 %v2295_v16  ;;  %2105 = vmatprep.subr.bf16.mxu0 %v2296_v17  ;;  %v2324_v60 = vld [vmem:[#allocation8 + $0x44] ss:$16 sps:$4 sm:$0xff] (!%p1977_p7)   ;;  %v2326_v61 = vld [vmem:[#allocation8 + $0x40] ss:$16 sps:$4 sm:$0xff] (!%p1977_p7)   ;;  %v2359_v36 = vld [vmem:[#allocation8 + $0xac] ss:$16 sps:$4 sm:$0xff] (!%p1977_p7)  }
  0xcf   : > { %2127 = vmatprep.subr.bf16.mxu1 %v2297_v18  ;;  %v2327_v62 = vld [vmem:[#allocation8 + $0x64] ss:$16 sps:$4 sm:$0xff] (!%p1977_p7)   ;;  %v2329_v63 = vld [vmem:[#allocation8 + $0x60] ss:$16 sps:$4 sm:$0xff] (!%p1977_p7)  }
  0xd0   : > { %v2330_v0 = vld [vmem:[#allocation8 + $0x84] ss:$16 sps:$4 sm:$0xff] (!%p1977_p7)   ;;  %v2332_v1 = vld [vmem:[#allocation8 + $0x80] ss:$16 sps:$4 sm:$0xff] (!%p1977_p7)  }
  0xd1   : > { %2106 = vmatpush3.bf16.msra.mxu0 %v2298_v19  ;;  %v2333_v2 = vld [vmem:[#allocation8 + $0xa4] ss:$16 sps:$4 sm:$0xff] (!%p1977_p7)   ;;  %v2335_v3 = vld [vmem:[#allocation8 + $0xa0] ss:$16 sps:$4 sm:$0xff] (!%p1977_p7)   ;;  %v2342_v19 = vld [vmem:[#allocation8 + $0x8] ss:$16 sps:$4 sm:$0xff] (!%p1977_p7)  }
  0xd2   : > { %2128 = vmatpush3.bf16.msra.mxu1 %v2299_v20  ;;  %2107 = vmatprep.subr.bf16.mxu0 %v2300_v21  ;;  %v2336_v4 = vld [vmem:[#allocation8 + $0xc4] ss:$16 sps:$4 sm:$0xff] (!%p1977_p7)   ;;  %v2338_v5 = vld [vmem:[#allocation8 + $0xc0] ss:$16 sps:$4 sm:$0xff] (!%p1977_p7)   ;;  %v2347_v20 = vld [vmem:[#allocation8 + $0x2c] ss:$16 sps:$4 sm:$0xff] (!%p1977_p7)  }
  0xd3   : > { %2129 = vmatprep.subr.bf16.mxu1 %v2301_v22  ;;  %v2339_v8 = vld [vmem:[#allocation8 + $0xe4] ss:$16 sps:$4 sm:$0xff] (!%p1977_p7)   ;;  %v2341_v10 = vld [vmem:[#allocation8 + $0xe0] ss:$16 sps:$4 sm:$0xff] (!%p1977_p7)  }
  0xd4   : > { %v2369_v9 = vld [vmem:[#allocation9 + $0x14] ss:$8 sps:$4 sm:$0xff] (!%p1977_p7)   ;;  %v2371_v12 = vld [vmem:[#allocation9 + $0x10] ss:$8 sps:$4 sm:$0xff] (!%p1977_p7)   ;;  %v2372_v13 = vld [vmem:[#allocation9 + $0x24] ss:$8 sps:$4 sm:$0xff] (!%p1977_p7)  }
  0xd5   : > { %2108 = vmatpush3.bf16.msra.mxu0 %v2302_v23  ;;  %v2374_v16 = vld [vmem:[#allocation9 + $0x20] ss:$8 sps:$4 sm:$0xff] (!%p1977_p7)   ;;  %v2375_v18 = vld [vmem:[#allocation9 + $0x34] ss:$8 sps:$4 sm:$0xff] (!%p1977_p7)   ;;  %v2377_v21 = vld [vmem:[#allocation9 + $0x30] ss:$8 sps:$4 sm:$0xff] (!%p1977_p7)  }
  0xd6   : > { %2130 = vmatpush3.bf16.msra.mxu1 %v2303_v24  ;;  %2109 = vmatprep.subr.bf16.mxu0 %v2304_v25  ;;  %v2378_v22 = vld [vmem:[#allocation9 + $0x44] ss:$8 sps:$4 sm:$0xff] (!%p1977_p7)   ;;  %v2345_v23 = vld [vmem:[#allocation8 + $0x28] ss:$16 sps:$4 sm:$0xff] (!%p1977_p7)   ;;  %v2387_v34 = vld [vmem:[#allocation9 + $0x74] ss:$8 sps:$4 sm:$0xff] (!%p1977_p7)  }
  0xd7   : > { %2131 = vmatprep.subr.bf16.mxu1 %v2305_v26  ;;  %v2350_v24 = vld [vmem:[#allocation8 + $0x4c] ss:$16 sps:$4 sm:$0xff] (!%p1977_p7)   ;;  %v2380_v25 = vld [vmem:[#allocation9 + $0x40] ss:$8 sps:$4 sm:$0xff] (!%p1977_p7)  }
  0xd8   : > { %v2381_v26 = vld [vmem:[#allocation9 + $0x54] ss:$8 sps:$4 sm:$0xff] (!%p1977_p7)  }
  0xd9   : > { %2110 = vmatpush3.bf16.msra.mxu0 %v2306_v27  ;;  %v2348_v27 = vld [vmem:[#allocation8 + $0x48] ss:$16 sps:$4 sm:$0xff] (!%p1977_p7)  }
  0xda   : > { %2132 = vmatpush3.bf16.msra.mxu1 %v2307_v28  ;;  %2111 = vmatprep.subr.bf16.mxu0 %v2308_v29  ;;  %v2353_v28 = vld [vmem:[#allocation8 + $0x6c] ss:$16 sps:$4 sm:$0xff] (!%p1977_p7)   ;;  %v2383_v29 = vld [vmem:[#allocation9 + $0x50] ss:$8 sps:$4 sm:$0xff] (!%p1977_p7)  }
  0xdb   : > { %2133 = vmatprep.subr.bf16.mxu1 %v2309_v30  ;;  %v2384_v30 = vld [vmem:[#allocation9 + $0x64] ss:$8 sps:$4 sm:$0xff] (!%p1977_p7)  }
  0xdd   : > { %2112 = vmatpush3.bf16.msra.mxu0 %v2310_v31  ;;  %v2351_v31 = vld [vmem:[#allocation8 + $0x68] ss:$16 sps:$4 sm:$0xff] (!%p1977_p7)  }
  0xde   : > { %2134 = vmatpush3.bf16.msra.mxu1 %v2311_v32  ;;  %1511 = vmatprep.subr.bf16.mxu0 (!%p1977_p7), %v2366_v6  ;;  %v2356_v32 = vld [vmem:[#allocation8 + $0x8c] ss:$16 sps:$4 sm:$0xff] (!%p1977_p7)  }
  0xdf   : > { %1017 = vmatprep.subr.bf16.mxu1 (!%p1977_p7), %v2318_v55  ;;  %v2408_v55 = vld [vmem:[#allocation9 + $0xe4] ss:$8 sps:$4 sm:$0xff] (!%p1977_p7)  }
  0xe0   : > { %743 = vmatmul.mubr.bf16.vlgmr.msra.gmra.mrb[0].mxu0 %v2312_v33  ;;  %v2386_v33 = vld [vmem:[#allocation9 + $0x60] ss:$8 sps:$4 sm:$0xff] (!%p1977_p7)  }
  0xe1   : > { %784 = vmatmul.mubr.bf16.vlgmr.msra.gmra.mrb[0].mxu1 %v2315_v35  ;;  %1512 = vmatpush1.bf16.msra.mxu0 (!%p1977_p7), %v2368_v7  ;;  %v2354_v35 = vld [vmem:[#allocation8 + $0x88] ss:$16 sps:$4 sm:$0xff] (!%p1977_p7)  }
  0xe2   : > { %1049 = vmatprep.mubr.bf16.mxu1 (!%p1977_p7), %v2733_v57  ;;  %1018 = vmatpush1.bf16.msra.mxu1 (!%p1977_p7), %v2320_v56  ;;  %v2410_v56 = vld [vmem:[#allocation9 + $0xe0] ss:$8 sps:$4 sm:$0xff] (!%p1977_p7)  }
  0xe3   : > { %1019 = vmatprep.subr.bf16.mxu1 (!%p1977_p7), %v2321_v58  ;;  %1513 = vmatprep.subr.bf16.mxu0 (!%p1977_p7), %v2369_v9  ;;  %v2413_v58 = vld [vmem:[#allocation9 + $0xf0] ss:$8 sps:$4 sm:$0xff] (!%p1977_p7)  }
  0xe5   : > { %1514 = vmatpush1.bf16.msra.mxu0 (!%p1977_p7), %v2371_v12 }
  0xe6   : > { %1020 = vmatpush1.bf16.msra.mxu1 (!%p1977_p7), %v2323_v59  ;;  %1515 = vmatprep.subr.bf16.mxu0 (!%p1977_p7), %v2372_v13  ;;  %v2416_v59 = vld [vmem:[#allocation9 + $0x104] ss:$8 sps:$4 sm:$0xff] (!%p1977_p7)  }
  0xe7   : > { %1021 = vmatprep.subr.bf16.mxu1 (!%p1977_p7), %v2324_v60  ;;  %v837_v60 = vlaneseq (!%p1977_p7) }
  0xe9   : > { %1516 = vmatpush1.bf16.msra.mxu0 (!%p1977_p7), %v2374_v16 }
  0xea   : > { %1022 = vmatpush1.bf16.msra.mxu1 (!%p1977_p7), %v2326_v61  ;;  %1517 = vmatprep.subr.bf16.mxu0 (!%p1977_p7), %v2375_v18  ;;  %v3089_v61 = vshrl.u32 (!%p1977_p7), %v837_v60, 7  ;;  %v2419_v18 = vld [vmem:[#allocation9 + $0x114] ss:$8 sps:$4 sm:$0xff] (!%p1977_p7)  }
  0xeb   : > { %1023 = vmatprep.subr.bf16.mxu1 (!%p1977_p7), %v2327_v62  ;;  %v2455_v60 = vld [vmem:[#allocation9 + $0x1d4] ss:$8 sps:$4 sm:$0xff] (!%p1977_p7)  }
  0xec   : > { %v839_v62 = vsub.s32 (!%p1977_p7), 0, %v3089_v61 }
  0xed   : > { %1518 = vmatpush1.bf16.msra.mxu0 (!%p1977_p7), %v2377_v21  ;;  %v2420_v21 = vld [vmem:[#allocation9 + $0x120] ss:$8 sps:$4 sm:$0xff] (!%p1977_p7)  }
  0xee   : > { %1024 = vmatpush1.bf16.msra.mxu1 (!%p1977_p7), %v2329_v63  ;;  %1519 = vmatprep.subr.bf16.mxu0 (!%p1977_p7), %v2378_v22  ;;  %v835_v63 = vld [vmem:[%s3156_s3] sm:$0xf] (!%p1977_p7)  ;;  %v2425_v22 = vld [vmem:[#allocation9 + $0x134] ss:$8 sps:$4 sm:$0xff] (!%p1977_p7)  }
  0xef   : > { %1025 = vmatprep.subr.bf16.mxu1 (!%p1977_p7), %v2330_v0  ;;  %v843_v0 = vsub.s32 (!%p1977_p7), 1, %v3089_v61 }
  0xf1   : > { %1520 = vmatpush1.bf16.msra.mxu0 (!%p1977_p7), %v2380_v25  ;;  %v2426_v25 = vld [vmem:[#allocation9 + $0x140] ss:$8 sps:$4 sm:$0xff] (!%p1977_p7)  }
  0xf2   : > { %1026 = vmatpush1.bf16.msra.mxu1 (!%p1977_p7), %v2332_v1  ;;  %1521 = vmatprep.subr.bf16.mxu0 (!%p1977_p7), %v2381_v26  ;;  %v840_v1 = vrot.slane (!%p1977_p7), %v835_v63, %v839_v62  ;;  %v2431_v26 = vld [vmem:[#allocation9 + $0x154] ss:$8 sps:$4 sm:$0xff] (!%p1977_p7)  }
  0xf3   : > { %1027 = vmatprep.subr.bf16.mxu1 (!%p1977_p7), %v2333_v2  ;;  %v844_v2 = vrot.slane (!%p1977_p7), %v835_v63, %v843_v0 }
  0xf5   : > { %1522 = vmatpush1.bf16.msra.mxu0 (!%p1977_p7), %v2383_v29  ;;  %v2429_v29 = vld [vmem:[#allocation9 + $0x150] ss:$8 sps:$4 sm:$0xff] (!%p1977_p7)  }
  0xf6   : > { %1028 = vmatpush1.bf16.msra.mxu1 (!%p1977_p7), %v2335_v3  ;;  %1523 = vmatprep.subr.bf16.mxu0 (!%p1977_p7), %v2384_v30  ;;  %v2434_v30 = vld [vmem:[#allocation9 + $0x164] ss:$8 sps:$4 sm:$0xff] (!%p1977_p7)  }
  0xf7   : > { %1029 = vmatprep.subr.bf16.mxu1 (!%p1977_p7), %v2336_v4 }
  0xf9   : > { %1524 = vmatpush1.bf16.msra.mxu0 (!%p1977_p7), %v2386_v33  ;;  %v2432_v33 = vld [vmem:[#allocation9 + $0x160] ss:$8 sps:$4 sm:$0xff] (!%p1977_p7)  }
  0xfa   : > { %1030 = vmatpush1.bf16.msra.mxu1 (!%p1977_p7), %v2338_v5  ;;  %1525 = vmatprep.subr.bf16.mxu0 (!%p1977_p7), %v2387_v34 }
  0xfb   : > { %1031 = vmatprep.subr.bf16.mxu1 (!%p1977_p7), %v2339_v8 }
  0xfe   : > { %1032 = vmatpush1.bf16.msra.mxu1 (!%p1977_p7), %v2341_v10 }
  0xff   : > { %1060 = vmatprep.subr.bf16.mxu1 (!%p1977_p7), %v2344_v15 }
 0x1b3   : > { %v2113_v37 = vpop.f32.mrb[0].mxu0 }
 0x1b4   : > { %v2135_v38 = vpop.f32.mrb[0].mxu1  ;;  %v2114_v39 = vpop.f32.mrb[1].mxu0 }
 0x1b5   : > { %v2115_v40 = vadd.f32 %v2114_v39, %v2113_v37  ;;  %v2136_v41 = vpop.f32.mrb[1].mxu1  ;;  %v2116_v42 = vpop.f32.mrb[2].mxu0  ;;  %v2389_v37 = vld [vmem:[#allocation9 + $0x70] ss:$8 sps:$4 sm:$0xff] (!%p1977_p7)  }
 0x1b6   : > { %v2137_v43 = vadd.f32 %v2136_v41, %v2135_v38  ;;  %v2138_v44 = vpop.f32.mrb[2].mxu1  ;;  %v2117_v45 = vpop.f32.mrb[3].mxu0  ;;  %v2390_v38 = vld [vmem:[#allocation9 + $0x84] ss:$8 sps:$4 sm:$0xff] (!%p1977_p7)   ;;  %v2357_v39 = vld [vmem:[#allocation8 + $0xa8] ss:$16 sps:$4 sm:$0xff] (!%p1977_p7)   ;;  %1526 = vmatpush1.bf16.msra.mxu0 (!%p1977_p7), %v2389_v37 }
 0x1b7   : > { %v2118_v47 = vadd.f32 %v2117_v45, %v2116_v42  ;;  %v2139_v48 = vpop.f32.mrb[3].mxu1  ;;  %v2392_v41 = vld [vmem:[#allocation9 + $0x80] ss:$8 sps:$4 sm:$0xff] (!%p1977_p7)   ;;  %v2393_v42 = vld [vmem:[#allocation9 + $0x94] ss:$8 sps:$4 sm:$0xff] (!%p1977_p7)   ;;  %1527 = vmatprep.subr.bf16.mxu0 (!%p1977_p7), %v2390_v38 }
 0x1b8   : > { %v786_v49 = vadd.f32 %v2137_v43, %v2115_v40  ;;  %v2140_v50 = vadd.f32 %v2139_v48, %v2138_v44  ;;  %799 = sbr.rel (%p1977_p7) target bundleno = 1345 (0x541), region = 80  ;;  %v2362_v40 = vld [vmem:[#allocation8 + $0xcc] ss:$16 sps:$4 sm:$0xff] (!%p1977_p7)   ;;  %v2360_v43 = vld [vmem:[#allocation8 + $0xc8] ss:$16 sps:$4 sm:$0xff] (!%p1977_p7)  }
 0x1b9   : > { %v2365_v44 = vld [vmem:[#allocation8 + $0xec] ss:$16 sps:$4 sm:$0xff] (!%p1977_p7)   ;;  %v2395_v45 = vld [vmem:[#allocation9 + $0x90] ss:$8 sps:$4 sm:$0xff] (!%p1977_p7)   ;;  %v2398_v48 = vld [vmem:[#allocation9 + $0xa0] ss:$8 sps:$4 sm:$0xff] (!%p1977_p7)  }
 0x1ba   : > { %v792_v52 = vadd.f32 %v786_v49, %v428_v46  ;;  %v789_v53 = vadd.f32 %v2140_v50, %v2118_v47  ;;  %v2396_v46 = vld [vmem:[#allocation9 + $0xa4] ss:$8 sps:$4 sm:$0xff] (!%p1977_p7)   ;;  %v2363_v47 = vld [vmem:[#allocation8 + $0xe8] ss:$16 sps:$4 sm:$0xff] (!%p1977_p7)   ;;  %1528 = vmatpush1.bf16.msra.mxu0 (!%p1977_p7), %v2392_v41  ;;  %v2399_v49 = vld [vmem:[#allocation9 + $0xb4] ss:$8 sps:$4 sm:$0xff] (!%p1977_p7)  }
 0x1bb   : > { %1529 = vmatprep.subr.bf16.mxu0 (!%p1977_p7), %v2393_v42  ;;  %v2401_v50 = vld [vmem:[#allocation9 + $0xb0] ss:$8 sps:$4 sm:$0xff] (!%p1977_p7)  }
 0x1bc   : > { %794 = vst [vmem:[#allocation2] sm:$0xff] %v792_v52  ;;  %v793_v54 = vadd.f32 %v789_v53, %v429_v51  ;;  %v2402_v51 = vld [vmem:[#allocation9 + $0xc4] ss:$8 sps:$4 sm:$0xff] (!%p1977_p7)   ;;  %v2404_v52 = vld [vmem:[#allocation9 + $0xc0] ss:$8 sps:$4 sm:$0xff] (!%p1977_p7)  }
 0x1bd   : > { %v2405_v53 = vld [vmem:[#allocation9 + $0xd4] ss:$8 sps:$4 sm:$0xff] (!%p1977_p7)  }
 0x1be   : > { %795 = vst [vmem:[#allocation2 + $0x8] sm:$0xff] %v793_v54  ;;  %1530 = vmatpush1.bf16.msra.mxu0 (!%p1977_p7), %v2395_v45  ;;  %v2407_v54 = vld [vmem:[#allocation9 + $0xd0] ss:$8 sps:$4 sm:$0xff] (!%p1977_p7)  }
 0x1bf   : > { %1531 = vmatprep.subr.bf16.mxu0 %v2396_v46  ;;  %v2440_v46 = vld [vmem:[#allocation9 + $0x184] ss:$8 sps:$4 sm:$0xff]  }
 0x1c2   : > { %1532 = vmatpush1.bf16.msra.mxu0 %v2398_v48 }
 0x1c3   : > { %v800_v11 = vld [vmem:[#allocation2] sm:$0xff]  ;;  %1533 = vmatprep.subr.bf16.mxu0 %v2399_v49 }
 0x1c5   : > { %v801_v14 = vld [vmem:[#allocation2 + $0x8] sm:$0xff] }
 0x1c6   : > { %v3085_v17 = vpack.c.bf16 %v801_v14, %v800_v11  ;;  %1534 = vmatpush1.bf16.msra.mxu0 %v2401_v50  ;;  %v2438_v50 = vld [vmem:[#allocation9 + $0x180] ss:$8 sps:$4 sm:$0xff]  }
 0x1c7   : > { %1535 = vmatprep.subr.bf16.mxu0 %v2402_v51 }
 0x1c8   : > { %1050 = vmatmul.mubr.bf16.vlgmr.msra.gmra.mrb[0].mxu1 %v3085_v17 }
 0x1c9   : > { %1061 = vmatpush1.bf16.msra.mxu1 %v2342_v19  ;;  %1092 = vmatprep.mubr.bf16.mxu1 %v2733_v57  ;;  %v2411_v57 = vld [vmem:[#allocation9 + $0xf4] ss:$8 sps:$4 sm:$0xff]   ;;  %v2417_v19 = vld [vmem:[#allocation9 + $0x110] ss:$8 sps:$4 sm:$0xff]  }
 0x1ca   : > { %1062 = vmatprep.subr.bf16.mxu1 %v2347_v20  ;;  %1536 = vmatpush1.bf16.msra.mxu0 %v2404_v52  ;;  %v2422_v20 = vld [vmem:[#allocation9 + $0x124] ss:$8 sps:$4 sm:$0xff]   ;;  %v2443_v52 = vld [vmem:[#allocation9 + $0x194] ss:$8 sps:$4 sm:$0xff]  }
 0x1cb   : > { %1537 = vmatprep.subr.bf16.mxu0 %v2405_v53  ;;  %v2441_v53 = vld [vmem:[#allocation9 + $0x190] ss:$8 sps:$4 sm:$0xff]  }
 0x1cd   : > { %1063 = vmatpush1.bf16.msra.mxu1 %v2345_v23  ;;  %v2423_v23 = vld [vmem:[#allocation9 + $0x130] ss:$8 sps:$4 sm:$0xff]  }
 0x1ce   : > { %1064 = vmatprep.subr.bf16.mxu1 %v2350_v24  ;;  %1538 = vmatpush1.bf16.msra.mxu0 %v2407_v54  ;;  %v2428_v24 = vld [vmem:[#allocation9 + $0x144] ss:$8 sps:$4 sm:$0xff]  }
 0x1cf   : > { %1539 = vmatprep.subr.bf16.mxu0 %v2408_v55  ;;  %v2446_v54 = vld [vmem:[#allocation9 + $0x1a4] ss:$8 sps:$4 sm:$0xff]   ;;  %v2444_v55 = vld [vmem:[#allocation9 + $0x1a0] ss:$8 sps:$4 sm:$0xff]  }
 0x1d1   : > { %1065 = vmatpush1.bf16.msra.mxu1 %v2348_v27  ;;  %v847_v27 = vsub.s32 2, %v3089_v61 }
 0x1d2   : > { %1066 = vmatprep.subr.bf16.mxu1 %v2353_v28  ;;  %1540 = vmatpush1.bf16.msra.mxu0 %v2410_v56  ;;  %v851_v28 = vsub.s32 3, %v3089_v61  ;;  %v2449_v56 = vld [vmem:[#allocation9 + $0x1b4] ss:$8 sps:$4 sm:$0xff]   ;;  %v2470_v61 = vld [vmem:[#allocation11 + $0x60] sm:$0xff]  }
 0x1d3   : > { %1541 = vmatprep.subr.bf16.mxu0 %v2411_v57  ;;  %v2447_v57 = vld [vmem:[#allocation9 + $0x1b0] ss:$8 sps:$4 sm:$0xff]  }
 0x1d5   : > { %1067 = vmatpush1.bf16.msra.mxu1 %v2351_v31  ;;  %v848_v31 = vrot.slane %v835_v63, %v847_v27 }
 0x1d6   : > { %1068 = vmatprep.subr.bf16.mxu1 %v2356_v32  ;;  %1542 = vmatpush1.bf16.msra.mxu0 %v2413_v58  ;;  %v852_v32 = vrot.slane %v835_v63, %v851_v28  ;;  %v2452_v58 = vld [vmem:[#allocation9 + $0x1c4] ss:$8 sps:$4 sm:$0xff]   ;;  %v2453_v63 = vld [vmem:[#allocation9 + $0x1d0] ss:$8 sps:$4 sm:$0xff]  }
 0x1d7   : > { %1554 = vmatprep.subr.bf16.mxu0 %v2416_v59  ;;  %v2450_v59 = vld [vmem:[#allocation9 + $0x1c0] ss:$8 sps:$4 sm:$0xff]   ;;  %v2469_v28 = vld [vmem:[#allocation11 + $0x18] sm:$0xff]  }
 0x1d9   : > { %1069 = vmatpush1.bf16.msra.mxu1 %v2354_v35  ;;  %v2437_v35 = vld [vmem:[#allocation9 + $0x174] ss:$8 sps:$4 sm:$0xff]  }
 0x1da   : > { %1070 = vmatprep.subr.bf16.mxu1 %v2359_v36 }
 0x1dd   : > { %1071 = vmatpush1.bf16.msra.mxu1 %v2357_v39 }
 0x1de   : > { %1072 = vmatprep.subr.bf16.mxu1 %v2362_v40 }
 0x1e1   : > { %1073 = vmatpush1.bf16.msra.mxu1 %v2360_v43  ;;  %v2435_v43 = vld [vmem:[#allocation9 + $0x170] ss:$8 sps:$4 sm:$0xff]  }
 0x1e2   : > { %1074 = vmatprep.subr.bf16.mxu1 %v2365_v44 }
 0x1e5   : > { %1075 = vmatpush1.bf16.msra.mxu1 %v2363_v47 }
 0x1e8   : > { %1093 = vmatmul.mubr.bf16.vlgmr.msra.gmra.mrb[4].mxu1 %v3085_v17  ;;  %v2414_v17 = vld [vmem:[#allocation9 + $0x100] ss:$8 sps:$4 sm:$0xff]  }
 0x29b   : > { %v1051_v3 = vpop.f32.mrb[0].mxu1 }
 0x29c   : > { %v1052_v4 = vadd.f32 %v1051_v3, %v840_v1  ;;  %v1053_v5 = vpop.f32.mrb[1].mxu1  ;;  %v2461_v3 = vld [vmem:[#allocation9 + $0x1f4] ss:$8 sps:$4 sm:$0xff]  }
 0x29d   : > { %v1054_v6 = vadd.f32 %v1053_v5, %v844_v2  ;;  %v1055_v7 = vpop.f32.mrb[2].mxu1  ;;  %v2462_v5 = vld [vmem:[#allocation11 + $0x40] sm:$0xff]  }
 0x29e   : > { %v1056_v8 = vadd.f32 %v1055_v7, %v840_v1  ;;  %v1057_v9 = vpop.f32.mrb[3].mxu1  ;;  %v1103_v11 = vmax.f32 %v1052_v4, 0.0  ;;  %v2458_v1 = vld [vmem:[#allocation9 + $0x1e4] ss:$8 sps:$4 sm:$0xff]   ;;  %v2459_v4 = vld [vmem:[#allocation9 + $0x1f0] ss:$8 sps:$4 sm:$0xff]   ;;  %2141 = vmatprep.subr.bf16.mxu1 %v2462_v5 }
 0x29f   : > { %v1058_v10 = vadd.f32 %v1057_v9, %v844_v2  ;;  %v1104_v13 = vmax.f32 %v1054_v6, 0.0  ;;  %v2456_v2 = vld [vmem:[#allocation9 + $0x1e0] ss:$8 sps:$4 sm:$0xff]   ;;  %v2466_v9 = vld [vmem:[#allocation11 + $0x50] sm:$0xff]  }
 0x2a0   : > { %v1107_v12 = vmax.f32 %v1056_v8, 0.0  ;;  %v2463_v6 = vld [vmem:[#allocation11] sm:$0xff]   ;;  %v2464_v7 = vld [vmem:[#allocation11 + $0x48] sm:$0xff]  }
 0x2a1   : > { %v1108_v14 = vmax.f32 %v1058_v10, 0.0  ;;  %2142 = vmatpush3.bf16.msra.mxu1 %v2463_v6  ;;  %v2465_v8 = vld [vmem:[#allocation11 + $0x8] sm:$0xff]   ;;  %v2467_v10 = vld [vmem:[#allocation11 + $0x10] sm:$0xff]  }
 0x2a2   : > { %v1111_v15 = vpack.c.bf16 %v1107_v12, %v1103_v11  ;;  %2143 = vmatprep.subr.bf16.mxu1 %v2464_v7  ;;  %v1179_v11 = vld [vmem:[%s3158_s5] sm:$0x3] }
 0x2a3   : > { %v1112_v16 = vpack.c.bf16 %v1108_v14, %v1104_v13  ;;  %v1184_v12 = vrot.slane %v1179_v11, %v839_v62  ;;  %v1188_v13 = vrot.slane %v1179_v11, %v843_v0  ;;  %v2468_v62 = vld [vmem:[#allocation11 + $0x58] sm:$0xff]   ;;  %v2471_v0 = vld [vmem:[#allocation11 + $0x20] sm:$0xff]  }
 0x2a5   : > { %1543 = vmatprep.mubr.bf16.mxu0 %v1112_v16  ;;  %2144 = vmatpush3.bf16.msra.mxu1 %v2465_v8 }
 0x2a6   : > { %1544 = vmatmul.mubr.bf16.vlgmr.msra.gmra.mrb[0].mxu0 %v1111_v15  ;;  %2145 = vmatprep.subr.bf16.mxu1 %v2466_v9 }
 0x2a7   : > { %1555 = vmatpush1.bf16.msra.mxu0 %v2414_v17 }
 0x2a8   : > { %1556 = vmatprep.subr.bf16.mxu0 %v2419_v18 }
 0x2a9   : > { %2146 = vmatpush3.bf16.msra.mxu1 %v2467_v10 }
 0x2aa   : > { %2147 = vmatprep.subr.bf16.mxu1 %v2468_v62 }
 0x2ab   : > { %1557 = vmatpush1.bf16.msra.mxu0 %v2417_v19 }
 0x2ac   : > { %1558 = vmatprep.subr.bf16.mxu0 %v2422_v20 }
 0x2ad   : > { %2148 = vmatpush3.bf16.msra.mxu1 %v2469_v28 }
 0x2ae   : > { %2149 = vmatprep.subr.bf16.mxu1 %v2470_v61 }
 0x2af   : > { %1559 = vmatpush1.bf16.msra.mxu0 %v2420_v21 }
 0x2b0   : > { %1560 = vmatprep.subr.bf16.mxu0 %v2425_v22 }
 0x2b1   : > { %2150 = vmatpush3.bf16.msra.mxu1 %v2471_v0 }
 0x2b3   : > { %1561 = vmatpush1.bf16.msra.mxu0 %v2423_v23 }
 0x2b4   : > { %1562 = vmatprep.subr.bf16.mxu0 %v2428_v24 }
 0x2b7   : > { %1563 = vmatpush1.bf16.msra.mxu0 %v2426_v25 }
 0x2b8   : > { %1564 = vmatprep.subr.bf16.mxu0 %v2431_v26 }
 0x2bb   : > { %1565 = vmatpush1.bf16.msra.mxu0 %v2429_v29  ;;  %v1094_v34 = vpop.f32.mrb[4].mxu1  ;;  %v2472_v29 = vld [vmem:[#allocation11 + $0x68] sm:$0xff]  }
 0x2bc   : > { %1566 = vmatprep.subr.bf16.mxu0 %v2434_v30  ;;  %v1095_v36 = vadd.f32 %v1094_v34, %v848_v31  ;;  %v1096_v37 = vpop.f32.mrb[5].mxu1  ;;  %v2473_v30 = vld [vmem:[#allocation11 + $0x28] sm:$0xff]   ;;  %2151 = vmatprep.subr.bf16.mxu1 %v2472_v29  ;;  %v2477_v34 = vld [vmem:[#allocation11 + $0x38] sm:$0xff]  }
 0x2bd   : > { %v1097_v38 = vadd.f32 %v1096_v37, %v852_v32  ;;  %v1098_v39 = vpop.f32.mrb[6].mxu1  ;;  %2152 = vmatpush3.bf16.msra.mxu1 %v2473_v30 }
 0x2be   : > { %v1105_v40 = vmax.f32 %v1095_v36, 0.0  ;;  %v1099_v41 = vadd.f32 %v1098_v39, %v848_v31  ;;  %v1100_v42 = vpop.f32.mrb[7].mxu1  ;;  %v2474_v31 = vld [vmem:[#allocation11 + $0x70] sm:$0xff]  }
 0x2bf   : > { %1567 = vmatpush1.bf16.msra.mxu0 %v2432_v33  ;;  %v1106_v44 = vmax.f32 %v1097_v38, 0.0  ;;  %v1101_v45 = vadd.f32 %v1100_v42, %v852_v32  ;;  %v2475_v32 = vld [vmem:[#allocation11 + $0x30] sm:$0xff]   ;;  %2153 = vmatprep.subr.bf16.mxu1 %v2474_v31  ;;  %v2476_v33 = vld [vmem:[#allocation11 + $0x78] sm:$0xff]  }
 0x2c0   : > { %1568 = vmatprep.subr.bf16.mxu0 %v2437_v35  ;;  %v1109_v47 = vmax.f32 %v1099_v41, 0.0 }
 0x2c1   : > { %v1110_v48 = vmax.f32 %v1101_v45, 0.0  ;;  %2154 = vmatpush3.bf16.msra.mxu1 %v2475_v32 }
 0x2c2   : > { %v1113_v49 = vpack.c.bf16 %v1109_v47, %v1105_v40  ;;  %2155 = vmatprep.subr.bf16.mxu1 %v2476_v33 }
 0x2c3   : > { %1569 = vmatpush1.bf16.msra.mxu0 %v2435_v43  ;;  %v1114_v51 = vpack.c.bf16 %v1110_v48, %v1106_v44  ;;  %v2074_v48 = vld [vmem:[%s3198_s0] ss:$0 sm:$0xff] }
 0x2c4   : > { %1570 = vmatprep.subr.bf16.mxu0 %v2440_v46 }
 0x2c5   : > { %1586 = vmatprep.mubr.bf16.mxu0 %v1114_v51  ;;  %2156 = vmatpush3.bf16.msra.mxu1 %v2477_v34 }
 0x2c7   : > { %1571 = vmatpush1.bf16.msra.mxu0 %v2438_v50 }
 0x2c8   : > { %1572 = vmatprep.subr.bf16.mxu0 %v2443_v52 }
 0x2cb   : > { %1573 = vmatpush1.bf16.msra.mxu0 %v2441_v53 }
 0x2cc   : > { %1574 = vmatprep.subr.bf16.mxu0 %v2446_v54 }
 0x2cf   : > { %1575 = vmatpush1.bf16.msra.mxu0 %v2444_v55 }
 0x2d0   : > { %1576 = vmatprep.subr.bf16.mxu0 %v2449_v56 }
 0x2d3   : > { %1577 = vmatpush1.bf16.msra.mxu0 %v2447_v57 }
 0x2d4   : > { %1578 = vmatprep.subr.bf16.mxu0 %v2452_v58 }
 0x2d7   : > { %1579 = vmatpush1.bf16.msra.mxu0 %v2450_v59 }
 0x2d8   : > { %1580 = vmatprep.subr.bf16.mxu0 %v2455_v60 }
 0x2db   : > { %1581 = vmatpush1.bf16.msra.mxu0 %v2453_v63 }
 0x2dc   : > { %1582 = vmatprep.subr.bf16.mxu0 %v2458_v1 }
 0x2df   : > { %1583 = vmatpush1.bf16.msra.mxu0 %v2456_v2 }
 0x2e0   : > { %1584 = vmatprep.subr.bf16.mxu0 %v2461_v3 }
 0x2e3   : > { %1585 = vmatpush1.bf16.msra.mxu0 %v2459_v4 }
 0x2e6   : > { %1587 = vmatmul.mubr.bf16.vlgmr.msra.gmra.mrb[0].mxu0 %v1113_v49 }
 0x3b9   : > { %v1588_v14 = vpop.f32.mrb[0].mxu0 }
 0x3ba   : > { %v2163_v15 = vadd.f32 %v1588_v14, %v1184_v12  ;;  %v1590_v16 = vpop.f32.mrb[1].mxu0 }
 0x3bb   : > { %v2164_v17 = vadd.f32 %v1590_v16, %v1188_v13  ;;  %v1592_v18 = vpop.f32.mrb[2].mxu0 }
 0x3bc   : > { %v2165_v19 = vadd.f32 %v1592_v18, %v1184_v12  ;;  %v1594_v20 = vpop.f32.mrb[3].mxu0  ;;  %v1597_v21 = vmul.f32 %v2163_v15, %v2163_v15 }
 0x3bd   : > { %v2166_v22 = vadd.f32 %v1594_v20, %v1188_v13  ;;  %v1598_v23 = vmul.f32 %v2164_v17, %v2164_v17 }
 0x3be   : > { %v1599_v24 = vmul.f32 %v2165_v19, %v2165_v19 }
 0x3bf   : > { %v1600_v25 = vmul.f32 %v2166_v22, %v2166_v22  ;;  %v1601_v26 = vadd.f32 %v1598_v23, %v1597_v21 }
 0x3c1   : > { %1602 = vadd.xlane.f32.xlu0 %v1601_v26  ;;  %v1604_v27 = vadd.f32 %v1600_v25, %v1599_v24 }
 0x3c5   : > { %1605 = vadd.xlane.f32.xlu0 %v1604_v27 }
 0x44e   : > { %v1603_v35 = vpop.xlane.xlu0 %1602 }
 0x44f   : > { %v1607_v36 = vmax.f32 %v1603_v35, 1e-24 }
 0x451   : > { %2478 = vrsqrt.f32 %v1607_v36 }
 0x452   : > { %v1606_v37 = vpop.xlane.xlu0 %1605 }
 0x453   : > { %v1608_v38 = vmax.f32 %v1606_v37, 1e-24 }
 0x455   : > { %2480 = vrsqrt.f32 %v1608_v38 }
 0x45b   : > { %v2479_v39 = vpop.eup %2478 }
 0x45c   : > { %v1612_v41 = vmul.f32 %v2479_v39, %v2164_v17  ;;  %v1611_v43 = vmul.f32 %v2479_v39, %v2163_v15 }
 0x45f   : > { %v2481_v40 = vpop.eup %2480 }
 0x460   : > { %v1614_v42 = vmul.f32 %v2481_v40, %v2166_v22  ;;  %v1613_v44 = vmul.f32 %v2481_v40, %v2165_v19 }
 0x462   : > { %v1616_v45 = vpack.c.bf16 %v1614_v42, %v1612_v41  ;;  %v1615_v46 = vpack.c.bf16 %v1613_v44, %v1611_v43 }
 0x464   : > { %1784 = vmatprep.mubr.bf16.mxu1 %v1616_v45 }
 0x465   : > { %1785 = vmatmul.mubr.bf16.vlgmr.msra.gmra.mrb[8].mxu1 %v1615_v46 }
 0x538   : > { %v2157_v47 = vpop.f32.mrb[8].mxu1 }
 0x539   : > { %v2158_v49 = vpop.f32.mrb[9].mxu1 }
 0x53a   : > { %v2159_v50 = vadd.f32 %v2158_v49, %v2157_v47  ;;  %v2160_v51 = vpop.f32.mrb[10].mxu1 }
 0x53b   : > { %v2161_v52 = vpop.f32.mrb[11].mxu1 }
 0x53c   : > { %v1787_v53 = vadd.f32 %v2159_v50, %v2074_v48  ;;  %v2162_v54 = vadd.f32 %v2161_v52, %v2160_v51 }
 0x53e   : > { %1793 = vst [vmem:[#allocation12] sm:$0xff] %v1787_v53  ;;  %v1790_v55 = vadd.f32 %v2162_v54, %v2074_v48 }
 0x540   : > { %1794 = vst [vmem:[#allocation12 + $0x8] sm:$0xff] %v1790_v55 }
 0x541 PF: > { %p2215_p9 = scmp.eq.s32.totalorder %s2811_s11, 1  ;;  %s2734_s24 = smov [#allocation12]  }
 0x542   : > { %s1804_s15 = sshll.u32 %s2734_s24, 4  ;;  %s1805_s15 = int_to_ptr.vmem [resolvable:$true] %s1804_s15 }
 0x543   : > { %s2626_s25 = scalar_lea.vmem %s1805_s15, 256  ;;  %p2633_p1 = scmp.lt.s32.totalorder %s1805_s15, %s1805_s15 }
 0x544   : > { %p2627_p10 = scmp.ne.s32.totalorder %s1805_s15, %s2626_s25  ;;  %p2634_p3 = scmp.lt.s32.totalorder %s2626_s25, %s2626_s25 }
 0x546   : > { %p2628_p11 = pnand %p2627_p10, %p2215_p9  ;;  %p2635_p2 = por %p2634_p3, %p2633_p1 }
 0x548   : > { %p2629_p5 = pneg %p2628_p11 }
 0x54a   : > { %p2636_p13 = pnand %p2635_p2, %p2629_p5 }
 0x54c   : > { %2639 = shalt.err (!%p2636_p13)
}
 0x54d   : > { %s3199_s27 = sld [smem:[#allocation22_spill]] }
 0x553   : > { %s3200_s16 = smov %s3199_s27  ;;  %s2640_s21 = scalar_lea.hbm %s3199_s27, 256 }
 0x554   : > { %p2641_p0 = scmp.ne.s32.totalorder %s3200_s16, %s2640_s21  ;;  %p2646_p12 = scmp.lt.u32.totalorder %s2640_s21, %s3200_s16 }
 0x556   : > { %p2642_p6 = pnand %p2641_p0, %p2215_p9 }
 0x558   : > { %p2643_p8 = pneg %p2642_p6 }
 0x55a   : > { %p2648_p4 = pnand %p2646_p12, %p2643_p8 }
 0x55c   : > { %2651 = shalt.err (!%p2648_p4)
}
 0x55d   : > { %s2735_s20 = smov 128   ;;  %s2736_s30 = smov 8  }
 0x55e   : > { %2188 = dma.vmem_to_hbm [thread:$0]  (%p2215_p9), %s1805_s15, 256, %s3200_s16, [#allocation5], %s2735_s20, %s2735_s20, %s2736_s30  }
 0x55f   : > { %2693 = dma.done.wait (%p2215_p9), [#allocation5], 256  }
 0x560   : > { %2695 = vsyncadd (%p2215_p9), [#allocation5], 4294967040 }
 0x561 PF: > { %s26_s10 = sadd.s32 1, %s2718_s10   ;;  %s3201_s27 = smov %s2702_s28 }
 0x562   : > { %p23_p7 = scmp.ge.s32.totalorder %s26_s10, 4   ;;  %s3202_s28 = smov %s2706_s29 }
 0x563   : > { %s3203_s29 = smov %s2981_s8  ;;  %s3204_s30 = smov %s2714_s9 }
 0x564   : > { %s3205_s9 = smov %s3207_s7  ;;  %25 = sbr.rel (!%p23_p7) target bundleno = 14 (0xe), region = 123 }
 0x56b   :  { %1820 = vsyncpa [#allocation4], 1 }
 0x56c   :  { %1822 = vsyncpa [#allocation4 + $0x1], 1 }
 0x56d   :  { %1823 = vsyncpa [#allocation7], 1 }
 0x56e   :  { %1825 = vsyncpa [#allocation7 + $0x1], 1 }
 0x56f   :  { %1826 = vsyncpa [#allocation10], 1 }
 0x570   :  { %1827 = vsyncpa [#allocation5], 1 }
 0x571   :  { %1829 = vsyncpa [#allocation5 + $0x1], 1 }

</bundles_post_ra>
